<compile_context>
chip_gen: v6e
topology: v6e:2x2x1
jax: 0.10.0
libtpu: 0.0.40
codegen_flags: <defaults>
</compile_context>

<pallas_src>
import functools

import jax
import jax.numpy as jnp
from jax import lax
from jax.experimental import pallas as pl
from jax.experimental.pallas import tpu as pltpu


def _round_up(x, m):
    return ((x + m - 1) // m) * m


# --------------------------------------------------------------------------- #
# Kernel
# --------------------------------------------------------------------------- #
def _critic_kernel(x_ref, w1_ref, w2_ref, w3_ref, aux_ref, b4_ref, q_ref):
    """One batch tile, all C critic towers.

    x_ref  : (TB, Dp)    f32   zero-padded concat(state, action)
    w1_ref : (Dp, C*H)   bf16  fc1 weight, fused over the concat & over critics
    w2_ref : (C, H, H)   bf16
    w3_ref : (C, H, H)   bf16
    aux_ref: (C, 4, H)   f32   rows: b1, b2, b3, q_value weight (w4)
    b4_ref : (C, 1)      f32   q_value bias
    q_ref  : (C, TB)     f32   lane-dense output (batch on the 128-lane axis)
    """
    f32, bf16 = jnp.float32, jnp.bfloat16
    num_c = w2_ref.shape[0]
    hidden = w2_ref.shape[2]

    # fc1: ONE bf16 matmul (K=Dp, N=C*H) covering state||action and all critics.
    x_bf = x_ref[...].astype(bf16)
    h1 = jnp.dot(x_bf, w1_ref[...], preferred_element_type=f32)   # (TB, C*H) f32

    q_rows = []
    for c in range(num_c):                        # static unroll; C is 1 or 2
        b1 = aux_ref[c, 0:1, :]
        b2 = aux_ref[c, 1:2, :]
        b3 = aux_ref[c, 2:3, :]
        w4 = aux_ref[c, 3:4, :]

        h = jnp.maximum(h1[:, c * hidden:(c + 1) * hidden] + b1, 0.0)
        # fc2 / fc3: bf16 activations straight into bf16-weight MXU matmuls,
        # f32 accumulation; bias + ReLU on the VPU in f32.
        h = jnp.dot(h.astype(bf16), w2_ref[c], preferred_element_type=f32) + b2
        h = jnp.maximum(h, 0.0)
        h = jnp.dot(h.astype(bf16), w3_ref[c], preferred_element_type=f32) + b3
        h = jnp.maximum(h, 0.0)
        # q head (H -> 1) on VPU/XLU slack: broadcast-multiply + lane reduce.
        q_rows.append(jnp.sum(h * w4, axis=-1))                   # (TB,)

    # Single full-block, lane-dense store of all critic rows (+ head bias).
    q = jnp.stack(q_rows, axis=0) + b4_ref[...]                    # (C, TB)
    q_ref[...] = q.astype(q_ref.dtype)


# --------------------------------------------------------------------------- #
# Wrapper / tiling policy
# --------------------------------------------------------------------------- #
def _resident(shape):
    """Whole-array VMEM block with a constant index_map: stays resident across
    the grid (Pallas skips the re-DMA when the block index repeats)."""
    nd = len(shape)
    return pl.BlockSpec(shape, lambda i, _nd=nd: (0,) * _nd)


def _num_tensorcores():
    """2 for 'megacore' chips (v4 / v5p / v7x), else 1 (v5e / v6e)."""
    try:
        kind = jax.devices()[0].device_kind.lower()
    except Exception:
        return 1
    return 2 if any(t in kind for t in ("v4", "v5p", "v7", "7x")) else 1


def _pick_tile_b(batch):
    """Generation-dependent batch tile.

    Single-TC chips (v5e/v6e): grid=1 whenever possible (each serial grid step
    costs ~0.35us of a few-us kernel).  2-TC chips (v4/v5p/v7x): split the
    batch into >=2 parallel tiles, multiples of 128 so the lane-dense (C, TB)
    output block satisfies the (8,128) rule.
    """
    b8 = _round_up(max(batch, 8), 8)
    if _num_tensorcores() >= 2 and b8 >= 256:
        return min(_round_up(-(-b8 // 2), 128), 512)
    return min(b8, 512)


@functools.partial(jax.jit, static_argnames=("tile_b",))
def _fused_forward(state, action, w1, w2, w3, aux, b4, *, tile_b):
    batch = state.shape[0]
    d_in = state.shape[1] + action.shape[1]
    d_pad = w1.shape[0]
    num_c = w2.shape[0]

    # concat(state, action) (+ zero pad to d_pad) done once here: a ~B*d_pad*4B
    # XLA copy, cheaper than extra DMA descriptors / split in-kernel dots.
    parts = [state.astype(jnp.float32), action.astype(jnp.float32)]
    if d_pad > d_in:
        parts.append(jnp.zeros((batch, d_pad - d_in), jnp.float32))
    xsa = jnp.concatenate(parts, axis=-1)

    bp = _round_up(batch, tile_b)
    if bp != batch:
        xsa = jnp.pad(xsa, ((0, bp - batch), (0, 0)))

    q = pl.pallas_call(
        _critic_kernel,
        out_shape=jax.ShapeDtypeStruct((num_c, bp), jnp.float32),
        grid=(bp // tile_b,),
        in_specs=[
            pl.BlockSpec((tile_b, d_pad), lambda i: (i, 0)),      # batch-tiled
            _resident(w1.shape), _resident(w2.shape), _resident(w3.shape),
            _resident(aux.shape), _resident(b4.shape),
        ],
        out_specs=pl.BlockSpec((num_c, tile_b), lambda i: (0, i)),
        compiler_params=pltpu.CompilerParams(
            dimension_semantics=("parallel",)),
    )(xsa, w1, w2, w3, aux, b4)
    return q[:, :batch]                      # (C, B); strip batch padding


def fused_critic_forward(state, action, packed, *, tile_b=None):
    """Run all C packed critic towers in one pallas_call. Returns (C, B) f32."""
    if tile_b is None:
        tile_b = _pick_tile_b(state.shape[0])
    return _fused_forward(state, action, *packed, tile_b=tile_b)


def critic_forward(state, action, packed, *, tile_b=None):
    """Single-critic forward matching torch CriticNetwork: returns (B, 1)."""
    q = fused_critic_forward(state, action, packed, tile_b=tile_b)
    return q[0][:, None]


# --------------------------------------------------------------------------- #
# Params: init + packing (off the hot path)
# --------------------------------------------------------------------------- #
def init_critic_params(key, s_dim, a_dim, hidden):
    """torch.nn.Linear-style init; weights stored as (fan_in, fan_out) == W.T."""
    def linear(k, fan_in, fan_out):
        kw, kb = jax.random.split(k)
        bound = 1.0 / float(fan_in) ** 0.5
        w = jax.random.uniform(kw, (fan_in, fan_out), jnp.float32, -bound, bound)
        b = jax.random.uniform(kb, (fan_out,), jnp.float32, -bound, bound)
        return w, b

    k1, k2, k3, k4 = jax.random.split(key, 4)
    d_in = s_dim + a_dim
    return (linear(k1, d_in, hidden),
            linear(k2, hidden, hidden),
            linear(k3, hidden, hidden),
            linear(k4, hidden, 1))


def pack_critics(params_list, weight_dtype=jnp.bfloat16):
    """Stack C critics' params into kernel layout.

    * fc1 weights fused into one (Dp, C*H) bf16 matrix (Dp = round_up(S+A, 8));
    * fc2/fc3 weights -> (C, H, H) bf16;
    * b1/b2/b3 and the q-head weight -> one f32 (C, 4, H) array;
    * q-head bias -> (C, 1) f32.
    """
    num_c = len(params_list)
    d_in = params_list[0][0][0].shape[0]
    hidden = params_list[0][1][0].shape[0]
    d_pad = _round_up(d_in, 8)

    w1 = jnp.zeros((d_pad, num_c * hidden), jnp.float32)
    w2, w3, aux, b4 = [], [], [], []
    for c, ((W1, B1), (W2, B2), (W3, B3), (W4, B4)) in enumerate(params_list):
        w1 = w1.at[:d_in, c * hidden:(c + 1) * hidden].set(W1)
        w2.append(W2.astype(weight_dtype))
        w3.append(W3.astype(weight_dtype))
        aux.append(jnp.stack([B1, B2, B3, W4[:, 0]], axis=0).astype(jnp.float32))
        b4.append(B4.astype(jnp.float32))
    return (w1.astype(weight_dtype),
            jnp.stack(w2), jnp.stack(w3), jnp.stack(aux), jnp.stack(b4))


# --------------------------------------------------------------------------- #
# Pure-jnp reference (emulates the kernel's bf16-in / f32-accumulate math)
# --------------------------------------------------------------------------- #
def reference_forward(state, action, params_list):
    """Matches kernel arithmetic: bf16-rounded weights AND activations feeding
    f32-accumulated matmuls (what the MXU computes); f32 biases/ReLU/head."""
    bf16, f32 = jnp.bfloat16, jnp.float32
    hi = lax.Precision.HIGHEST

    def mm(a, w):
        return jnp.dot(a.astype(bf16).astype(f32), w.astype(bf16).astype(f32),
                       precision=hi)

    x = jnp.concatenate([state, action], axis=-1)
    outs = []
    for (W1, B1), (W2, B2), (W3, B3), (W4, B4) in params_list:
        h = jnp.maximum(mm(x, W1) + B1, 0.0)
        h = jnp.maximum(mm(h, W2) + B2, 0.0)
        h = jnp.maximum(mm(h, W3) + B3, 0.0)
        q = jnp.dot(h, W4, precision=hi) + B4             # head stays f32
        outs.append(q[:, 0])
    return jnp.stack(outs, axis=0)                         # (C, B)


# --------------------------------------------------------------------------- #
if __name__ == "__main__":
    # hidden_dim=128 is the torch module default; state/action dims are small.
    B, S_DIM, A_DIM, HIDDEN = 256, 8, 4, 128

    key = jax.random.PRNGKey(0)
    k_state, k_action, k_q1, k_q2 = jax.random.split(key, 4)
    state = jax.random.normal(k_state, (B, S_DIM), jnp.float32)
    action = jax.random.normal(k_action, (B, A_DIM), jnp.float32)

    # --- single critic: exactly the torch CriticNetwork forward --------------
    q1_params = init_critic_params(k_q1, S_DIM, A_DIM, HIDDEN)
    q1_packed = pack_critics([q1_params])
    q1 = jax.block_until_ready(critic_forward(state, action, q1_packed))
    q1_ref = reference_forward(state, action, [q1_params])[0][:, None]
    assert q1.shape == (B, 1), q1.shape
    assert jnp.allclose(q1, q1_ref, atol=2e-3, rtol=2e-3), \
        float(jnp.max(jnp.abs(q1 - q1_ref)))

    # --- fused twin critics (SAC Q1/Q2) in a single pallas_call ---------------
    q2_params = init_critic_params(k_q2, S_DIM, A_DIM, HIDDEN)
    twin_packed = pack_critics([q1_params, q2_params])
    q12 = jax.block_until_ready(fused_critic_forward(state, action, twin_packed))
    q12_ref = reference_forward(state, action, [q1_params, q2_params])
    assert q12.shape == (2, B), q12.shape
    assert jnp.allclose(q12, q12_ref, atol=2e-3, rtol=2e-3), \
        float(jnp.max(jnp.abs(q12 - q12_ref)))
    assert jnp.allclose(q12[0][:, None], q1, atol=2e-3, rtol=2e-3)

    print("KERNEL_OK")
</pallas_src>

<mosaic_0001>
module attributes {stable_mosaic.version = 11 : i64} {
  func.func @_critic_kernel(%arg0: i32, %arg1: memref<256x16xf32, #tpu.memory_space<vmem>>, %arg2: memref<16x128xbf16, #tpu.memory_space<vmem>>, %arg3: memref<1x128x128xbf16, #tpu.memory_space<vmem>>, %arg4: memref<1x128x128xbf16, #tpu.memory_space<vmem>>, %arg5: memref<1x4x128xf32, #tpu.memory_space<vmem>>, %arg6: memref<1x1xf32, #tpu.memory_space<vmem>>, %arg7: memref<1x256xf32, #tpu.memory_space<vmem>>) attributes {dimension_semantics = [#tpu.dimension_semantics<parallel>], iteration_bounds = array<i64: 1>, scalar_prefetch = 0 : i64, scratch_operands = 0 : i64, tpu.core_type = #tpu.core_type<tc>, window_params = [{transform_indices = @transform_0, window_bounds = array<i64: 256, 16>}, {pipeline_mode = #tpu.pipeline_mode<synchronous>, transform_indices = @transform_1, window_bounds = array<i64: 16, 128>}, {pipeline_mode = #tpu.pipeline_mode<synchronous>, transform_indices = @transform_2, window_bounds = array<i64: 1, 128, 128>}, {pipeline_mode = #tpu.pipeline_mode<synchronous>, transform_indices = @transform_3, window_bounds = array<i64: 1, 128, 128>}, {pipeline_mode = #tpu.pipeline_mode<synchronous>, transform_indices = @transform_4, window_bounds = array<i64: 1, 4, 128>}, {pipeline_mode = #tpu.pipeline_mode<synchronous>, transform_indices = @transform_5, window_bounds = array<i64: 1, 1>}, {transform_indices = @transform_6, window_bounds = array<i64: 1, 256>}]} {
    %c0 = arith.constant 0 : index
    %c0_0 = arith.constant 0 : index
    %0 = vector.load %arg1[%c0, %c0_0] : memref<256x16xf32, #tpu.memory_space<vmem>>, vector<256x16xf32>
    %1 = arith.truncf %0 : vector<256x16xf32> to vector<256x16xbf16>
    %c0_1 = arith.constant 0 : index
    %c0_2 = arith.constant 0 : index
    %2 = vector.load %arg2[%c0_1, %c0_2] : memref<16x128xbf16, #tpu.memory_space<vmem>>, vector<16x128xbf16>
    %cst = arith.constant dense<0.000000e+00> : vector<256x128xf32>
    %3 = tpu.matmul %1, %2, %cst {dimension_numbers = #tpu.dot_dimension_numbers<[1], [0], [0], [1], [0, 0, 1, 1], [], []>} : vector<256x16xbf16>, vector<16x128xbf16>, vector<256x128xf32> -> vector<256x128xf32>
    %c0_3 = arith.constant 0 : index
    %c0_4 = arith.constant 0 : index
    %c0_5 = arith.constant 0 : index
    %4 = vector.load %arg5[%c0_3, %c0_4, %c0_5] : memref<1x4x128xf32, #tpu.memory_space<vmem>>, vector<1x1x128xf32>
    %5 = vector.shape_cast %4 : vector<1x1x128xf32> to vector<1x128xf32>
    %c0_6 = arith.constant 0 : index
    %c1 = arith.constant 1 : index
    %c0_7 = arith.constant 0 : index
    %6 = vector.load %arg5[%c0_6, %c1, %c0_7] : memref<1x4x128xf32, #tpu.memory_space<vmem>>, vector<1x1x128xf32>
    %7 = vector.shape_cast %6 : vector<1x1x128xf32> to vector<1x128xf32>
    %c0_8 = arith.constant 0 : index
    %c2 = arith.constant 2 : index
    %c0_9 = arith.constant 0 : index
    %8 = vector.load %arg5[%c0_8, %c2, %c0_9] : memref<1x4x128xf32, #tpu.memory_space<vmem>>, vector<1x1x128xf32>
    %9 = vector.shape_cast %8 : vector<1x1x128xf32> to vector<1x128xf32>
    %c0_10 = arith.constant 0 : index
    %c3 = arith.constant 3 : index
    %c0_11 = arith.constant 0 : index
    %10 = vector.load %arg5[%c0_10, %c3, %c0_11] : memref<1x4x128xf32, #tpu.memory_space<vmem>>, vector<1x1x128xf32>
    %11 = vector.shape_cast %10 : vector<1x1x128xf32> to vector<1x128xf32>
    %12 = vector.broadcast %5 : vector<1x128xf32> to vector<256x128xf32>
    %13 = arith.addf %3, %12 : vector<256x128xf32>
    %cst_12 = arith.constant 0.000000e+00 : f32
    %14 = vector.broadcast %cst_12 : f32 to vector<256x128xf32>
    %15 = arith.maximumf %13, %14 : vector<256x128xf32>
    %16 = arith.truncf %15 : vector<256x128xf32> to vector<256x128xbf16>
    %c0_13 = arith.constant 0 : index
    %c0_14 = arith.constant 0 : index
    %c0_15 = arith.constant 0 : index
    %17 = vector.load %arg3[%c0_13, %c0_14, %c0_15] : memref<1x128x128xbf16, #tpu.memory_space<vmem>>, vector<1x128x128xbf16>
    %18 = vector.shape_cast %17 : vector<1x128x128xbf16> to vector<128x128xbf16>
    %cst_16 = arith.constant dense<0.000000e+00> : vector<256x128xf32>
    %19 = tpu.matmul %16, %18, %cst_16 {dimension_numbers = #tpu.dot_dimension_numbers<[1], [0], [0], [1], [0, 0, 1, 1], [], []>} : vector<256x128xbf16>, vector<128x128xbf16>, vector<256x128xf32> -> vector<256x128xf32>
    %20 = vector.broadcast %7 : vector<1x128xf32> to vector<256x128xf32>
    %21 = arith.addf %19, %20 : vector<256x128xf32>
    %cst_17 = arith.constant 0.000000e+00 : f32
    %22 = vector.broadcast %cst_17 : f32 to vector<256x128xf32>
    %23 = arith.maximumf %21, %22 : vector<256x128xf32>
    %24 = arith.truncf %23 : vector<256x128xf32> to vector<256x128xbf16>
    %c0_18 = arith.constant 0 : index
    %c0_19 = arith.constant 0 : index
    %c0_20 = arith.constant 0 : index
    %25 = vector.load %arg4[%c0_18, %c0_19, %c0_20] : memref<1x128x128xbf16, #tpu.memory_space<vmem>>, vector<1x128x128xbf16>
    %26 = vector.shape_cast %25 : vector<1x128x128xbf16> to vector<128x128xbf16>
    %cst_21 = arith.constant dense<0.000000e+00> : vector<256x128xf32>
    %27 = tpu.matmul %24, %26, %cst_21 {dimension_numbers = #tpu.dot_dimension_numbers<[1], [0], [0], [1], [0, 0, 1, 1], [], []>} : vector<256x128xbf16>, vector<128x128xbf16>, vector<256x128xf32> -> vector<256x128xf32>
    %28 = vector.broadcast %9 : vector<1x128xf32> to vector<256x128xf32>
    %29 = arith.addf %27, %28 : vector<256x128xf32>
    %cst_22 = arith.constant 0.000000e+00 : f32
    %30 = vector.broadcast %cst_22 : f32 to vector<256x128xf32>
    %31 = arith.maximumf %29, %30 : vector<256x128xf32>
    %32 = vector.broadcast %11 : vector<1x128xf32> to vector<256x128xf32>
    %33 = arith.mulf %31, %32 : vector<256x128xf32>
    %cst_23 = arith.constant dense<0.000000e+00> : vector<256xf32>
    %34 = vector.multi_reduction <add>, %33, %cst_23 [1] : vector<256x128xf32> to vector<256xf32>
    %35 = vector.shape_cast %34 : vector<256xf32> to vector<1x256xf32>
    %c0_24 = arith.constant 0 : index
    %c0_25 = arith.constant 0 : index
    %36 = vector.load %arg6[%c0_24, %c0_25] : memref<1x1xf32, #tpu.memory_space<vmem>>, vector<1x1xf32>
    %37 = vector.broadcast %36 : vector<1x1xf32> to vector<1x256xf32>
    %38 = arith.addf %35, %37 : vector<1x256xf32>
    %c0_26 = arith.constant 0 : index
    %c0_27 = arith.constant 0 : index
    %39 = vector.load %arg7[%c0_26, %c0_27] : memref<1x256xf32, #tpu.memory_space<vmem>>, vector<1x256xf32>
    tpu.vector_store %arg7[%c0_26, %c0_27], %38 {strides = array<i32>} : memref<1x256xf32, #tpu.memory_space<vmem>>, vector<1x256xf32>,
    return
  }
  func.func @transform_0(%arg0: i32) -> (i32, i32) {
    %c0_i32 = arith.constant 0 : i32
    %c0_i32_0 = arith.constant 0 : i32
    return %arg0, %c0_i32 : i32, i32
  }
  func.func @transform_1(%arg0: i32) -> (i32, i32) {
    %c0_i32 = arith.constant 0 : i32
    %c0_i32_0 = arith.constant 0 : i32
    %c0_i32_1 = arith.constant 0 : i32
    return %c0_i32, %c0_i32_0 : i32, i32
  }
  func.func @transform_2(%arg0: i32) -> (i32, i32, i32) {
    %c0_i32 = arith.constant 0 : i32
    %c0_i32_0 = arith.constant 0 : i32
    %c0_i32_1 = arith.constant 0 : i32
    %c0_i32_2 = arith.constant 0 : i32
    return %c0_i32, %c0_i32_0, %c0_i32_1 : i32, i32, i32
  }
  func.func @transform_3(%arg0: i32) -> (i32, i32, i32) {
    %c0_i32 = arith.constant 0 : i32
    %c0_i32_0 = arith.constant 0 : i32
    %c0_i32_1 = arith.constant 0 : i32
    %c0_i32_2 = arith.constant 0 : i32
    return %c0_i32, %c0_i32_0, %c0_i32_1 : i32, i32, i32
  }
  func.func @transform_4(%arg0: i32) -> (i32, i32, i32) {
    %c0_i32 = arith.constant 0 : i32
    %c0_i32_0 = arith.constant 0 : i32
    %c0_i32_1 = arith.constant 0 : i32
    %c0_i32_2 = arith.constant 0 : i32
    return %c0_i32, %c0_i32_0, %c0_i32_1 : i32, i32, i32
  }
  func.func @transform_5(%arg0: i32) -> (i32, i32) {
    %c0_i32 = arith.constant 0 : i32
    %c0_i32_0 = arith.constant 0 : i32
    %c0_i32_1 = arith.constant 0 : i32
    return %c0_i32, %c0_i32_0 : i32, i32
  }
  func.func @transform_6(%arg0: i32) -> (i32, i32) {
    %c0_i32 = arith.constant 0 : i32
    %c0_i32_0 = arith.constant 0 : i32
    return %c0_i32, %arg0 : i32, i32
  }
}

</mosaic_0001>

<bundles_post_ra>
// kernel: _fused_forward.1
= control target key start
LH: loop header
LB: loop body
LE: loop exit
PB: predicated region body
PF: predicated region fallthrough
CT: control target
= control target key end

     0   :  { %s5545_s0 = inlined_call_operand.vmem [shape: f32[256,16], index: 0, kind: input, shape index: {}]   ;;  %s5546_s1 = inlined_call_operand.vmem [shape: bf16[16,128], index: 1, kind: input, shape index: {}]   ;;  %s5547_s2 = inlined_call_operand.vmem [shape: bf16[1,128,128], index: 2, kind: input, shape index: {}]   ;;  %s5548_s3 = inlined_call_operand.vmem [shape: bf16[1,128,128], index: 3, kind: input, shape index: {}]   ;;  %s5549_s4 = inlined_call_operand.vmem [shape: f32[1,4,128], index: 4, kind: input, shape index: {}]   ;;  %s5550_s5 = inlined_call_operand.<no memory space> [shape: f32[1,1], index: 5, kind: input, shape index: {}]   ;;  %s5551_s6 = inlined_call_operand.hbm [shape: f32[1,256], index: 6, kind: output, shape index: {}]  }
   0x1   :  { %v11_v0 = vstv %s5550_s5 }
   0x2   :  { %12 = vst [vmem:[#allocation2] sm:$0x1] %v11_v0 }
   0x3   :  { %v4213_v1 = vld [vmem:[%s5546_s1] sm:$0xff]   ;;  %v28_v3 = vld [vmem:[%s5545_s0 + $0x8] sm:$0xff]  ;;  %vm91_vm0 = vcmask 130048   ;;  %v29_v4 = vld [vmem:[%s5545_s0 + $0x10] sm:$0xff] }
   0x4   :  { %v27_v2 = vld [vmem:[%s5545_s0] sm:$0xff]  ;;  %4076 = vmatprep.subr.bf16.mxu0 %v4213_v1  ;;  %v30_v6 = vld [vmem:[%s5545_s0 + $0x18] sm:$0xff]  ;;  %v32_v8 = vld [vmem:[%s5545_s0 + $0x28] sm:$0xff]  ;;  %4206 = vmatprep.subr.bf16.mxu1 %v4213_v1 }
   0x5   :  { %v59_v5 = vpack.c.bf16 %v28_v3, %v27_v2  ;;  %v31_v7 = vld [vmem:[%s5545_s0 + $0x20] sm:$0xff]  ;;  %4077 = vmatpush3.bf16.msra.mxu0 %v4213_v1  ;;  %v60_v9 = vpack.c.bf16 %v30_v6, %v29_v4  ;;  %4207 = vmatpush3.bf16.msra.mxu1 %v4213_v1  ;;  %v33_v11 = vld [vmem:[%s5545_s0 + $0x30] sm:$0xff]  ;;  %v34_v12 = vld [vmem:[%s5545_s0 + $0x38] sm:$0xff] }
   0x6   :  { %v61_v10 = vpack.c.bf16 %v32_v8, %v31_v7  ;;  %v43_v13 = vld [vmem:[%s5545_s0 + $0x80] sm:$0xff]  ;;  %v44_v14 = vld [vmem:[%s5545_s0 + $0x88] sm:$0xff]  ;;  %v45_v16 = vld [vmem:[%s5545_s0 + $0x90] sm:$0xff]  ;;  %v62_v24 = vpack.c.bf16 %v34_v12, %v33_v11 }
   0x7   :  { %4078 = vmatprep.mubr.msk.bf16.mxu0 %vm91_vm0, %v59_v5  ;;  %v67_v15 = vpack.c.bf16 %v44_v14, %v43_v13  ;;  %v46_v17 = vld [vmem:[%s5545_s0 + $0x98] sm:$0xff]  ;;  %v47_v18 = vld [vmem:[%s5545_s0 + $0xa0] sm:$0xff]  ;;  %v36_v20 = vld [vmem:[%s5545_s0 + $0x48] sm:$0xff] }
   0x8   :  { %4079 = vmatmul.mubr.msk.bf16.vlgmr.msra.gmra.mxu0 %vm91_vm0, %v60_v9  ;;  %v35_v19 = vld [vmem:[%s5545_s0 + $0x40] sm:$0xff]  ;;  %v68_v21 = vpack.c.bf16 %v46_v17, %v45_v16  ;;  %v48_v22 = vld [vmem:[%s5545_s0 + $0xa8] sm:$0xff]  ;;  %v49_v25 = vld [vmem:[%s5545_s0 + $0xb0] sm:$0xff] }
   0x9   :  { %4082 = vmatprep.mubr.msk.bf16.mxu0 %vm91_vm0, %v61_v10  ;;  %4094 = vmatprep.mubr.msk.bf16.mxu1 %vm91_vm0, %v67_v15  ;;  %v69_v23 = vpack.c.bf16 %v48_v22, %v47_v18  ;;  %v50_v26 = vld [vmem:[%s5545_s0 + $0xb8] sm:$0xff]  ;;  %v63_v27 = vpack.c.bf16 %v36_v20, %v35_v19  ;;  %v51_v28 = vld [vmem:[%s5545_s0 + $0xc0] sm:$0xff]  ;;  %v52_v29 = vld [vmem:[%s5545_s0 + $0xc8] sm:$0xff] }
   0xa   :  { %4095 = vmatmul.mubr.msk.bf16.vlgmr.msra.gmra.mxu1 %vm91_vm0, %v68_v21  ;;  %v4214_v30 = vld [vmem:[%s5547_s2 + $0x38] sm:$0xff]   ;;  %v37_v31 = vld [vmem:[%s5545_s0 + $0x50] sm:$0xff]  ;;  %v39_v34 = vld [vmem:[%s5545_s0 + $0x60] sm:$0xff]  ;;  %v70_v35 = vpack.c.bf16 %v50_v26, %v49_v25  ;;  %v71_v37 = vpack.c.bf16 %v52_v29, %v51_v28 }
   0xb   :  { %4098 = vmatprep.mubr.msk.bf16.mxu1 %vm91_vm0, %v69_v23  ;;  %v38_v32 = vld [vmem:[%s5545_s0 + $0x58] sm:$0xff]  ;;  %v4215_v33 = vld [vmem:[%s5547_s2 + $0x30] sm:$0xff]   ;;  %4110 = vmatprep.subr.bf16.mxu1 %v4214_v30  ;;  %v40_v36 = vld [vmem:[%s5545_s0 + $0x68] sm:$0xff] }
   0xc   :  { %4111 = vmatpush3.bf16.msra.mxu1 %v4214_v30  ;;  %v4216_v38 = vld [vmem:[%s5547_s2 + $0x28] sm:$0xff]   ;;  %v53_v39 = vld [vmem:[%s5545_s0 + $0xd0] sm:$0xff]  ;;  %v54_v40 = vld [vmem:[%s5545_s0 + $0xd8] sm:$0xff]  ;;  %v64_v41 = vpack.c.bf16 %v38_v32, %v37_v31  ;;  %v65_v45 = vpack.c.bf16 %v40_v36, %v39_v34 }
   0xd   :  { %4112 = vmatprep.subr.bf16.mxu1 %v4215_v33  ;;  %v55_v42 = vld [vmem:[%s5545_s0 + $0xe0] sm:$0xff]  ;;  %v56_v43 = vld [vmem:[%s5545_s0 + $0xe8] sm:$0xff]  ;;  %v41_v46 = vld [vmem:[%s5545_s0 + $0x70] sm:$0xff]  ;;  %v72_v48 = vpack.c.bf16 %v54_v40, %v53_v39 }
   0xe   :  { %v4217_v44 = vld [vmem:[%s5547_s2 + $0x20] sm:$0xff]   ;;  %v42_v47 = vld [vmem:[%s5545_s0 + $0x78] sm:$0xff]  ;;  %v73_v49 = vpack.c.bf16 %v56_v43, %v55_v42 }
   0xf   :  { %v4218_v50 = vld [vmem:[%s5547_s2 + $0x18] sm:$0xff]  }
  0x10   :  { %4083 = vmatmul.mubr.msk.bf16.gmra.mxu0 %vm91_vm0, %v62_v24  ;;  %4113 = vmatpush3.bf16.msra.mxu1 %v4215_v33 }
  0x11   :  { %4086 = vmatprep.mubr.msk.bf16.mxu0 %vm91_vm0, %v63_v27  ;;  %4114 = vmatprep.subr.bf16.mxu1 %v4216_v38 }
  0x12   :  { %4099 = vmatmul.mubr.msk.bf16.gmra.mxu1 %vm91_vm0, %v70_v35 }
  0x13   :  { %4102 = vmatprep.mubr.msk.bf16.mxu1 %vm91_vm0, %v71_v37 }
  0x14   :  { %4115 = vmatpush3.bf16.msra.mxu1 %v4216_v38 }
  0x15   :  { %4116 = vmatprep.subr.bf16.mxu1 %v4217_v44 }
  0x18   :  { %4087 = vmatmul.mubr.msk.bf16.gmra.mxu0 %vm91_vm0, %v64_v41 }
  0x19   :  { %4090 = vmatprep.mubr.msk.bf16.mxu0 %vm91_vm0, %v65_v45 }
  0x1a   :  { %13 = vsyncpa [#allocation4], 0  ;;  %v66_v51 = vpack.c.bf16 %v42_v47, %v41_v46  ;;  %4103 = vmatmul.mubr.msk.bf16.gmra.mxu1 %vm91_vm0, %v72_v48  ;;  %v57_v52 = vld [vmem:[%s5545_s0 + $0xf0] sm:$0xff]  ;;  %v58_v53 = vld [vmem:[%s5545_s0 + $0xf8] sm:$0xff]  ;;  %vm3760_vm1 = vcmask 130112   ;;  %vm3767_vm2 = vcmask 195712  }
  0x1b   :  { %4106 = vmatprep.mubr.msk.bf16.mxu1 %vm91_vm0, %v73_v49  ;;  %4117 = vmatpush3.bf16.msra.mxu1 %v4217_v44  ;;  %v74_v54 = vpack.c.bf16 %v58_v53, %v57_v52  ;;  %v4219_v55 = vld [vmem:[%s5547_s2 + $0x10] sm:$0xff]   ;;  %v4220_v56 = vld [vmem:[%s5547_s2 + $0x8] sm:$0xff]   ;;  %v4221_v57 = vld [vmem:[%s5547_s2] sm:$0xff]   ;;  %vm3774_vm3 = vcmask 261312   ;;  %vm3781_vm4 = vcmask 326912   ;;  %vm3788_vm5 = vcmask 392512  }
  0x1c   :  { %4118 = vmatprep.subr.bf16.mxu1 %v4218_v50  ;;  %v4222_v58 = vld [vmem:[%s5548_s3 + $0x38] sm:$0xff]   ;;  %v4223_v59 = vld [vmem:[%s5548_s3 + $0x30] sm:$0xff]   ;;  %v4224_v60 = vld [vmem:[%s5548_s3 + $0x28] sm:$0xff]   ;;  %vm3795_vm6 = vcmask 458112   ;;  %vm3802_vm7 = vcmask 523712   ;;  %vm3809_vm8 = vcmask 589312  }
  0x1d   :  { %4158 = vmatprep.subr.bf16.mxu0 %v4222_v58  ;;  %v4225_v61 = vld [vmem:[%s5548_s3 + $0x20] sm:$0xff]   ;;  %v4226_v62 = vld [vmem:[%s5548_s3 + $0x18] sm:$0xff]   ;;  %vm3816_vm9 = vcmask 654912   ;;  %vm3823_vm10 = vcmask 720512   ;;  %vm3830_vm11 = vcmask 786112   ;;  %vm3837_vm12 = vcmask 851712  }
  0x1e   :  { %4159 = vmatpush3.bf16.msra.mxu0 %v4222_v58  ;;  %v4450_v1 = vld [vmem:[%s5549_s4] ss:$0 sm:$0xff]  ;;  %vm3844_vm13 = vcmask 917312   ;;  %vm3851_vm14 = vcmask 982912   ;;  %vm3858_vm15 = vcmask 1048512  }
  0x1f   :  { %4119 = vmatpush3.bf16.msra.mxu1 %v4218_v50  ;;  %4160 = vmatprep.subr.bf16.mxu0 %v4223_v59 }
  0x20   :  { %4091 = vmatmul.mubr.msk.bf16.gmra.mxu0 %vm91_vm0, %v66_v51  ;;  %4120 = vmatprep.subr.bf16.mxu1 %v4219_v55 }
  0x22   :  { %4107 = vmatmul.mubr.msk.bf16.gmra.mxu1 %vm91_vm0, %v74_v54  ;;  %4161 = vmatpush3.bf16.msra.mxu0 %v4223_v59 }
  0x23   :  { %4121 = vmatpush3.bf16.msra.mxu1 %v4219_v55  ;;  %4162 = vmatprep.subr.bf16.mxu0 %v4224_v60 }
  0x24   :  { %4122 = vmatprep.subr.bf16.mxu1 %v4220_v56 }
  0x26   :  { %4163 = vmatpush3.bf16.msra.mxu0 %v4224_v60 }
  0x27   :  { %4123 = vmatpush3.bf16.msra.mxu1 %v4220_v56  ;;  %4164 = vmatprep.subr.bf16.mxu0 %v4225_v61 }
  0x28   :  { %4124 = vmatprep.subr.bf16.mxu1 %v4221_v57 }
  0x2a   :  { %4165 = vmatpush3.bf16.msra.mxu0 %v4225_v61 }
  0x2b   :  { %4125 = vmatpush3.bf16.msra.mxu1 %v4221_v57  ;;  %4166 = vmatprep.subr.bf16.mxu0 %v4226_v62 }
  0x2e   :  { %4167 = vmatpush3.bf16.msra.mxu0 %v4226_v62 }
  0xc8   :  { %v4080_v63 = vpop.f32.mrf.mxu0 }
  0xc9   :  { %v183_v6 = vadd.f32 %v4080_v63, %v4450_v1 }
  0xca   :  { %v174_v0 = vpop.f32.mrf.mxu0  ;;  %v4452_v3 = vpop.f32.mrf.mxu1 }
  0xcb   :  { %v175_v4 = vadd.f32 %v4450_v1, %v174_v0  ;;  %v303_v15 = vmax.f32 %v183_v6, 0.0 }
  0xcc   :  { %v4081_v2 = vpop.f32.mrf.mxu0  ;;  %v238_v8 = vpop.f32.mrf.mxu1 }
  0xcd   :  { %v186_v5 = vadd.f32 %v4081_v2, %v4450_v1  ;;  %v301_v13 = vmax.f32 %v175_v4, 0.0  ;;  %v239_v53 = vadd.f32 %v4450_v1, %v238_v8 }
  0xce   :  { %v177_v7 = vpop.f32.mrf.mxu0  ;;  %v4458_v12 = vpop.f32.mrf.mxu1 }
  0xcf   :  { %v178_v9 = vadd.f32 %v4450_v1, %v177_v7  ;;  %v304_v10 = vmax.f32 %v186_v5, 0.0  ;;  %v317_v63 = vmax.f32 %v239_v53, 0.0  ;;  %v4508_v53 = vld [vmem:[%s5549_s4 + $0x1] ss:$0 sm:$0xff] }
  0xd0   :  { %v4084_v11 = vpop.f32.mrf.mxu0  ;;  %v241_v17 = vpop.f32.mrf.mxu1 }
  0xd1   :  { %v302_v14 = vmax.f32 %v178_v9, 0.0  ;;  %v334_v19 = vpack.c.bf16 %v304_v10, %v303_v15  ;;  %v199_v24 = vadd.f32 %v4084_v11, %v4450_v1  ;;  %v242_v54 = vadd.f32 %v4450_v1, %v241_v17 }
  0xd2   :  { %v190_v16 = vpop.f32.mrf.mxu0  ;;  %v4460_v21 = vpop.f32.mrf.mxu1  ;;  %v250_v15 = vadd.f32 %v4458_v12, %v4450_v1 }
  0xd3   :  { %v333_v18 = vpack.c.bf16 %v302_v14, %v301_v13  ;;  %v191_v22 = vadd.f32 %v4450_v1, %v190_v16  ;;  %v307_v33 = vmax.f32 %v199_v24, 0.0  ;;  %v318_v0 = vmax.f32 %v242_v54, 0.0 }
  0xd4   :  { %v4085_v20 = vpop.f32.mrf.mxu0  ;;  %v254_v26 = vpop.f32.mrf.mxu1  ;;  %v247_v14 = vadd.f32 %v4452_v3, %v4450_v1  ;;  %v263_v3 = vadd.f32 %v4460_v21, %v4450_v1 }
  0xd5   :  { %v202_v23 = vadd.f32 %v4085_v20, %v4450_v1  ;;  %4126 = vmatprep.mubr.bf16.mxu1 %v333_v18  ;;  %v305_v31 = vmax.f32 %v191_v22, 0.0  ;;  %v341_v9 = vpack.c.bf16 %v318_v0, %v317_v63  ;;  %v255_v10 = vadd.f32 %v4450_v1, %v254_v26 }
  0xd6   :  { %v193_v25 = vpop.f32.mrf.mxu0  ;;  %4127 = vmatmul.mubr.bf16.vlgmr.msra.gmra.mxu1 %v334_v19  ;;  %v4466_v30 = vpop.f32.mrf.mxu1  ;;  %v319_v19 = vmax.f32 %v247_v14, 0.0  ;;  %v320_v20 = vmax.f32 %v250_v15, 0.0 }
  0xd7   :  { %v194_v27 = vadd.f32 %v4450_v1, %v193_v25  ;;  %v308_v28 = vmax.f32 %v202_v23, 0.0  ;;  %v321_v17 = vmax.f32 %v255_v10, 0.0  ;;  %v266_v12 = vadd.f32 %v4466_v30, %v4450_v1 }
  0xd8   :  { %v4088_v29 = vpop.f32.mrf.mxu0  ;;  %v257_v38 = vpop.f32.mrf.mxu1  ;;  %v342_v26 = vpack.c.bf16 %v320_v20, %v319_v19 }
  0xd9   :  { %v306_v32 = vmax.f32 %v194_v27, 0.0  ;;  %v336_v36 = vpack.c.bf16 %v308_v28, %v307_v33  ;;  %v215_v41 = vadd.f32 %v4088_v29, %v4450_v1  ;;  %v258_v11 = vadd.f32 %v4450_v1, %v257_v38 }
  0xda   :  { %v206_v34 = vpop.f32.mrf.mxu0  ;;  %v4104_v43 = vpop.f32.mrf.mxu1 }
  0xdb   :  { %v335_v35 = vpack.c.bf16 %v306_v32, %v305_v31  ;;  %v207_v39 = vadd.f32 %v4450_v1, %v206_v34  ;;  %v311_v49 = vmax.f32 %v215_v41, 0.0  ;;  %v322_v18 = vmax.f32 %v258_v11, 0.0 }
  0xdc   :  { %v4089_v37 = vpop.f32.mrf.mxu0  ;;  %v270_v51 = vpop.f32.mrf.mxu1  ;;  %v323_v31 = vmax.f32 %v263_v3, 0.0  ;;  %v324_v32 = vmax.f32 %v266_v12, 0.0  ;;  %v279_v34 = vadd.f32 %v4104_v43, %v4450_v1 }
  0xdd   :  { %v218_v40 = vadd.f32 %v4089_v37, %v4450_v1  ;;  %4130 = vmatprep.mubr.bf16.mxu1 %v335_v35  ;;  %v309_v47 = vmax.f32 %v207_v39, 0.0  ;;  %v343_v23 = vpack.c.bf16 %v322_v18, %v321_v17  ;;  %v271_v24 = vadd.f32 %v4450_v1, %v270_v51 }
  0xde   :  { %v209_v42 = vpop.f32.mrf.mxu0  ;;  %4131 = vmatmul.mubr.bf16.gmra.mxu1 %v336_v36  ;;  %v4105_v61 = vpop.f32.mrf.mxu1  ;;  %v344_v38 = vpack.c.bf16 %v324_v32, %v323_v31  ;;  %v327_v39 = vmax.f32 %v279_v34, 0.0 }
  0xdf   :  { %v210_v44 = vadd.f32 %v4450_v1, %v209_v42  ;;  %v312_v45 = vmax.f32 %v218_v40, 0.0  ;;  %v325_v28 = vmax.f32 %v271_v24, 0.0  ;;  %v282_v35 = vadd.f32 %v4105_v61, %v4450_v1 }
  0xe0   :  { %v4092_v46 = vpop.f32.mrf.mxu0  ;;  %v273_v7 = vpop.f32.mrf.mxu1 }
  0xe1   :  { %v310_v48 = vmax.f32 %v210_v44, 0.0  ;;  %v338_v55 = vpack.c.bf16 %v312_v45, %v311_v49  ;;  %v231_v59 = vadd.f32 %v4092_v46, %v4450_v1  ;;  %v274_v25 = vadd.f32 %v4450_v1, %v273_v7  ;;  %v4227_v49 = vld [vmem:[%s5548_s3 + $0x10] sm:$0xff]  }
  0xe2   :  { %v222_v50 = vpop.f32.mrf.mxu0  ;;  %v4108_v16 = vpop.f32.mrf.mxu1  ;;  %v328_v30 = vmax.f32 %v282_v35, 0.0  ;;  %4168 = vmatprep.subr.bf16.mxu0 %v4227_v49 }
  0xe3   :  { %v337_v52 = vpack.c.bf16 %v310_v48, %v309_v47  ;;  %v223_v57 = vadd.f32 %v4450_v1, %v222_v50  ;;  %v315_v6 = vmax.f32 %v231_v59, 0.0  ;;  %v326_v29 = vmax.f32 %v274_v25, 0.0  ;;  %4169 = vmatpush3.bf16.msra.mxu0 %v4227_v49  ;;  %v4228_v50 = vld [vmem:[%s5548_s3 + $0x8] sm:$0xff]  }
  0xe4   :  { %v4093_v56 = vpop.f32.mrf.mxu0  ;;  %v286_v22 = vpop.f32.mrf.mxu1  ;;  %v346_v42 = vpack.c.bf16 %v328_v30, %v327_v39  ;;  %v295_v44 = vadd.f32 %v4108_v16, %v4450_v1  ;;  %4170 = vmatprep.subr.bf16.mxu0 %v4228_v50 }
  0xe5   :  { %v234_v58 = vadd.f32 %v4093_v56, %v4450_v1  ;;  %4134 = vmatprep.mubr.bf16.mxu1 %v337_v52  ;;  %v313_v4 = vmax.f32 %v223_v57, 0.0  ;;  %v345_v36 = vpack.c.bf16 %v326_v29, %v325_v28  ;;  %v287_v37 = vadd.f32 %v4450_v1, %v286_v22 }
  0xe6   :  { %v225_v60 = vpop.f32.mrf.mxu0  ;;  %4135 = vmatmul.mubr.bf16.gmra.mxu1 %v338_v55  ;;  %v4109_v27 = vpop.f32.mrf.mxu1  ;;  %v331_v46 = vmax.f32 %v295_v44, 0.0 }
  0xe7   :  { %v226_v62 = vadd.f32 %v4450_v1, %v225_v60  ;;  %v316_v2 = vmax.f32 %v234_v58, 0.0  ;;  %v329_v40 = vmax.f32 %v287_v37, 0.0  ;;  %v298_v45 = vadd.f32 %v4109_v27, %v4450_v1  ;;  %4171 = vmatpush3.bf16.msra.mxu0 %v4228_v50 }
  0xe8   :  { %v289_v33 = vpop.f32.mrf.mxu1 }
  0xe9   :  { %v314_v5 = vmax.f32 %v226_v62, 0.0  ;;  %v340_v13 = vpack.c.bf16 %v316_v2, %v315_v6  ;;  %v290_v21 = vadd.f32 %v4450_v1, %v289_v33  ;;  %v332_v47 = vmax.f32 %v298_v45, 0.0  ;;  %v4229_v1 = vld [vmem:[%s5548_s3] sm:$0xff]  }
  0xea   :  { %4172 = vmatprep.subr.bf16.mxu0 %v4229_v1 }
  0xeb   :  { %v339_v8 = vpack.c.bf16 %v314_v5, %v313_v4  ;;  %v330_v41 = vmax.f32 %v290_v21, 0.0  ;;  %v348_v48 = vpack.c.bf16 %v332_v47, %v331_v46  ;;  %4173 = vmatpush3.bf16.msra.mxu0 %v4229_v1 }
  0xed   :  { %4138 = vmatprep.mubr.bf16.mxu1 %v339_v8  ;;  %v347_v43 = vpack.c.bf16 %v330_v41, %v329_v40 }
  0xee   :  { %4139 = vmatmul.mubr.bf16.gmra.mxu1 %v340_v13 }
  0xef   :  { %4142 = vmatprep.mubr.bf16.mxu1 %v341_v9 }
  0xf6   :  { %4143 = vmatmul.mubr.bf16.gmra.mxu1 %v342_v26 }
  0xf7   :  { %4146 = vmatprep.mubr.bf16.mxu1 %v343_v23 }
  0xfe   :  { %4147 = vmatmul.mubr.bf16.gmra.mxu1 %v344_v38 }
  0xff   :  { %4150 = vmatprep.mubr.bf16.mxu1 %v345_v36 }
 0x106   :  { %4151 = vmatmul.mubr.bf16.gmra.mxu1 %v346_v42 }
 0x107   :  { %4154 = vmatprep.mubr.bf16.mxu1 %v347_v43 }
 0x10e   :  { %4155 = vmatmul.mubr.bf16.gmra.mxu1 %v348_v48 }
 0x196   :  { %v4128_v51 = vpop.f32.mrf.mxu1 }
 0x197   :  { %v460_v57 = vadd.f32 %v4128_v51, %v4508_v53 }
 0x198   :  { %v451_v52 = vpop.f32.mrf.mxu1 }
 0x199   :  { %v452_v55 = vadd.f32 %v4508_v53, %v451_v52  ;;  %v580_v0 = vmax.f32 %v460_v57, 0.0 }
 0x19a   :  { %v4129_v54 = vpop.f32.mrf.mxu1 }
 0x19b   :  { %v463_v56 = vadd.f32 %v4129_v54, %v4508_v53  ;;  %v578_v62 = vmax.f32 %v452_v55, 0.0 }
 0x19c   :  { %v454_v58 = vpop.f32.mrf.mxu1 }
 0x19d   :  { %v455_v59 = vadd.f32 %v4508_v53, %v454_v58  ;;  %v581_v60 = vmax.f32 %v463_v56, 0.0 }
 0x19e   :  { %v4132_v61 = vpop.f32.mrf.mxu1 }
 0x19f   :  { %v579_v63 = vmax.f32 %v455_v59, 0.0  ;;  %v611_v5 = vpack.c.bf16 %v581_v60, %v580_v0  ;;  %v476_v9 = vadd.f32 %v4132_v61, %v4508_v53 }
 0x1a0   :  { %v467_v2 = vpop.f32.mrf.mxu1 }
 0x1a1   :  { %v610_v4 = vpack.c.bf16 %v579_v63, %v578_v62  ;;  %v468_v7 = vadd.f32 %v4508_v53, %v467_v2  ;;  %v584_v17 = vmax.f32 %v476_v9, 0.0 }
 0x1a2   :  { %v4133_v6 = vpop.f32.mrf.mxu1 }
 0x1a3   :  { %v479_v8 = vadd.f32 %v4133_v6, %v4508_v53  ;;  %4174 = vmatprep.mubr.bf16.mxu0 %v610_v4  ;;  %v582_v15 = vmax.f32 %v468_v7, 0.0 }
 0x1a4   :  { %v470_v10 = vpop.f32.mrf.mxu1  ;;  %4175 = vmatmul.mubr.bf16.vlgmr.msra.gmra.mxu0 %v611_v5 }
 0x1a5   :  { %v471_v11 = vadd.f32 %v4508_v53, %v470_v10  ;;  %v585_v13 = vmax.f32 %v479_v8, 0.0 }
 0x1a6   :  { %v4136_v14 = vpop.f32.mrf.mxu1 }
 0x1a7   :  { %v583_v16 = vmax.f32 %v471_v11, 0.0  ;;  %v613_v20 = vpack.c.bf16 %v585_v13, %v584_v17  ;;  %v492_v25 = vadd.f32 %v4136_v14, %v4508_v53 }
 0x1a8   :  { %v483_v18 = vpop.f32.mrf.mxu1 }
 0x1a9   :  { %v612_v19 = vpack.c.bf16 %v583_v16, %v582_v15  ;;  %v484_v23 = vadd.f32 %v4508_v53, %v483_v18  ;;  %v588_v31 = vmax.f32 %v492_v25, 0.0 }
 0x1aa   :  { %v4137_v22 = vpop.f32.mrf.mxu1 }
 0x1ab   :  { %v495_v24 = vadd.f32 %v4137_v22, %v4508_v53  ;;  %4178 = vmatprep.mubr.bf16.mxu0 %v612_v19  ;;  %v586_v28 = vmax.f32 %v484_v23, 0.0 }
 0x1ac   :  { %v486_v26 = vpop.f32.mrf.mxu1  ;;  %4179 = vmatmul.mubr.bf16.gmra.mxu0 %v613_v20 }
 0x1ad   :  { %v487_v3 = vadd.f32 %v4508_v53, %v486_v26  ;;  %v589_v12 = vmax.f32 %v495_v24, 0.0 }
 0x1ae   :  { %v4140_v27 = vpop.f32.mrf.mxu1 }
 0x1af   :  { %v587_v29 = vmax.f32 %v487_v3, 0.0  ;;  %v615_v34 = vpack.c.bf16 %v589_v12, %v588_v31  ;;  %v508_v21 = vadd.f32 %v4140_v27, %v4508_v53 }
 0x1b0   :  { %v499_v32 = vpop.f32.mrf.mxu1 }
 0x1b1   :  { %v614_v33 = vpack.c.bf16 %v587_v29, %v586_v28  ;;  %v500_v36 = vadd.f32 %v4508_v53, %v499_v32  ;;  %v592_v44 = vmax.f32 %v508_v21, 0.0 }
 0x1b2   :  { %v4141_v35 = vpop.f32.mrf.mxu1 }
 0x1b3   :  { %v511_v37 = vadd.f32 %v4141_v35, %v4508_v53  ;;  %4182 = vmatprep.mubr.bf16.mxu0 %v614_v33  ;;  %v590_v41 = vmax.f32 %v500_v36, 0.0 }
 0x1b4   :  { %v502_v38 = vpop.f32.mrf.mxu1  ;;  %4183 = vmatmul.mubr.bf16.gmra.mxu0 %v615_v34 }
 0x1b5   :  { %v503_v39 = vadd.f32 %v4508_v53, %v502_v38  ;;  %v593_v30 = vmax.f32 %v511_v37, 0.0 }
 0x1b6   :  { %v4144_v40 = vpop.f32.mrf.mxu1 }
 0x1b7   :  { %v591_v42 = vmax.f32 %v503_v39, 0.0  ;;  %v617_v46 = vpack.c.bf16 %v593_v30, %v592_v44  ;;  %v524_v50 = vadd.f32 %v4144_v40, %v4508_v53  ;;  %v4252_v39 = vmov 0   ;;  %v4545_v30 = vld [vmem:[%s5549_s4 + $0x2] ss:$0 sm:$0xff] }
 0x1b8   :  { %v515_v45 = vpop.f32.mrf.mxu1  ;;  %4211 = vset.pattern.permute.xlu0 %v4252_v39  ;;  %4212 = vset.pattern.permute.xlu1 %v4252_v39 }
 0x1b9   :  { %v616_v43 = vpack.c.bf16 %v591_v42, %v590_v41  ;;  %v516_v48 = vadd.f32 %v4508_v53, %v515_v45  ;;  %v596_v57 = vmax.f32 %v524_v50, 0.0 }
 0x1ba   :  { %v4145_v47 = vpop.f32.mrf.mxu1 }
 0x1bb   :  { %v527_v49 = vadd.f32 %v4145_v47, %v4508_v53  ;;  %4186 = vmatprep.mubr.bf16.mxu0 %v616_v43  ;;  %v594_v55 = vmax.f32 %v516_v48, 0.0 }
 0x1bc   :  { %v518_v1 = vpop.f32.mrf.mxu1  ;;  %4187 = vmatmul.mubr.bf16.gmra.mxu0 %v617_v46 }
 0x1bd   :  { %v519_v51 = vadd.f32 %v4508_v53, %v518_v1  ;;  %v597_v52 = vmax.f32 %v527_v49, 0.0 }
 0x1be   :  { %v4148_v54 = vpop.f32.mrf.mxu1 }
 0x1bf   :  { %v595_v56 = vmax.f32 %v519_v51, 0.0  ;;  %v619_v60 = vpack.c.bf16 %v597_v52, %v596_v57  ;;  %v540_v0 = vadd.f32 %v4148_v54, %v4508_v53 }
 0x1c0   :  { %v531_v58 = vpop.f32.mrf.mxu1 }
 0x1c1   :  { %v618_v59 = vpack.c.bf16 %v595_v56, %v594_v55  ;;  %v532_v62 = vadd.f32 %v4508_v53, %v531_v58  ;;  %v600_v9 = vmax.f32 %v540_v0, 0.0 }
 0x1c2   :  { %v4149_v61 = vpop.f32.mrf.mxu1 }
 0x1c3   :  { %v543_v63 = vadd.f32 %v4149_v61, %v4508_v53  ;;  %4190 = vmatprep.mubr.bf16.mxu0 %v618_v59  ;;  %v598_v7 = vmax.f32 %v532_v62, 0.0 }
 0x1c4   :  { %v534_v2 = vpop.f32.mrf.mxu1  ;;  %4191 = vmatmul.mubr.bf16.gmra.mxu0 %v619_v60 }
 0x1c5   :  { %v535_v4 = vadd.f32 %v4508_v53, %v534_v2  ;;  %v601_v5 = vmax.f32 %v543_v63, 0.0 }
 0x1c6   :  { %v4152_v6 = vpop.f32.mrf.mxu1 }
 0x1c7   :  { %v599_v8 = vmax.f32 %v535_v4, 0.0  ;;  %v556_v10 = vadd.f32 %v4152_v6, %v4508_v53  ;;  %v621_v15 = vpack.c.bf16 %v601_v5, %v600_v9 }
 0x1c8   :  { %v547_v11 = vpop.f32.mrf.mxu1 }
 0x1c9   :  { %v620_v13 = vpack.c.bf16 %v599_v8, %v598_v7  ;;  %v548_v14 = vadd.f32 %v4508_v53, %v547_v11  ;;  %v604_v18 = vmax.f32 %v556_v10, 0.0 }
 0x1ca   :  { %v4153_v16 = vpop.f32.mrf.mxu1 }
 0x1cb   :  { %4194 = vmatprep.mubr.bf16.mxu0 %v620_v13  ;;  %v559_v17 = vadd.f32 %v4153_v16, %v4508_v53  ;;  %v602_v20 = vmax.f32 %v548_v14, 0.0 }
 0x1cc   :  { %4195 = vmatmul.mubr.bf16.gmra.mxu0 %v621_v15  ;;  %v550_v19 = vpop.f32.mrf.mxu1 }
 0x1cd   :  { %v605_v22 = vmax.f32 %v559_v17, 0.0  ;;  %v551_v23 = vadd.f32 %v4508_v53, %v550_v19 }
 0x1ce   :  { %v4156_v24 = vpop.f32.mrf.mxu1 }
 0x1cf   :  { %v603_v25 = vmax.f32 %v551_v23, 0.0  ;;  %v623_v26 = vpack.c.bf16 %v605_v22, %v604_v18  ;;  %v572_v3 = vadd.f32 %v4156_v24, %v4508_v53 }
 0x1d0   :  { %v563_v12 = vpop.f32.mrf.mxu1 }
 0x1d1   :  { %v622_v27 = vpack.c.bf16 %v603_v25, %v602_v20  ;;  %v564_v28 = vadd.f32 %v4508_v53, %v563_v12  ;;  %v608_v32 = vmax.f32 %v572_v3, 0.0 }
 0x1d2   :  { %v4157_v29 = vpop.f32.mrf.mxu1 }
 0x1d3   :  { %4198 = vmatprep.mubr.bf16.mxu0 %v622_v27  ;;  %v575_v31 = vadd.f32 %v4157_v29, %v4508_v53  ;;  %v606_v34 = vmax.f32 %v564_v28, 0.0 }
 0x1d4   :  { %4199 = vmatmul.mubr.bf16.gmra.mxu0 %v623_v26  ;;  %v566_v33 = vpop.f32.mrf.mxu1 }
 0x1d5   :  { %v609_v35 = vmax.f32 %v575_v31, 0.0  ;;  %v567_v36 = vadd.f32 %v4508_v53, %v566_v33  ;;  %v4551_v53 = vld [vmem:[%s5549_s4 + $0x3] ss:$0 sm:$0xff]  ;;  %s4254_s4 = smov [#allocation3]  }
 0x1d6   :  { %s3966_s22 = sshll.u32 %s4254_s4, 4  ;;  %s3967_s22 = int_to_ptr.vmem [resolvable:$true] %s3966_s22 }
 0x1d7   :  { %v607_v37 = vmax.f32 %v567_v36, 0.0  ;;  %v625_v21 = vpack.c.bf16 %v609_v35, %v608_v32  ;;  %s4230_s23 = scalar_lea.vmem %s3967_s22, 32  ;;  %p4235_p1 = scmp.lt.s32.totalorder %s3967_s22, %s3967_s22 }
 0x1d8   :  { %p4231_p0 = scmp.ne.s32.totalorder %s3967_s22, %s4230_s23  ;;  %p4236_p2 = scmp.lt.s32.totalorder %s4230_s23, %s4230_s23 }
 0x1d9   :  { %v624_v38 = vpack.c.bf16 %v607_v37, %v606_v34 }
 0x1da   :  { %p4237_p3 = por %p4236_p2, %p4235_p1 }
 0x1db   :  { %4202 = vmatprep.mubr.bf16.mxu0 %v624_v38 }
 0x1dc   :  { %4203 = vmatmul.mubr.bf16.gmra.mxu0 %v625_v21  ;;  %p4238_p4 = pnand %p4237_p3, %p4231_p0 }
 0x264   :  { %v4176_v40 = vpop.f32.mrf.mxu0 }
 0x265   :  { %v737_v41 = vadd.f32 %v4176_v40, %v4545_v30 }
 0x266   :  { %v728_v42 = vpop.f32.mrf.mxu0 }
 0x267   :  { %v857_v44 = vmax.f32 %v737_v41, 0.0  ;;  %v729_v45 = vadd.f32 %v4545_v30, %v728_v42 }
 0x268   :  { %v4177_v43 = vpop.f32.mrf.mxu0 }
 0x269   :  { %v855_v46 = vmax.f32 %v729_v45, 0.0  ;;  %v740_v47 = vadd.f32 %v4177_v43, %v4545_v30  ;;  %v893_v48 = vmul.f32 %v4551_v53, %v857_v44 }
 0x26a   :  { %v731_v49 = vpop.f32.mrf.mxu0 }
 0x26b   :  { %v858_v50 = vmax.f32 %v740_v47, 0.0  ;;  %v732_v1 = vadd.f32 %v4545_v30, %v731_v49  ;;  %927 = vadd.xlane.f32.xlu1 %v893_v48  ;;  %v891_v51 = vmul.f32 %v4551_v53, %v855_v46 }
 0x26c   :  { %v4180_v52 = vpop.f32.mrf.mxu0 }
 0x26d   :  { %v856_v54 = vmax.f32 %v732_v1, 0.0  ;;  %v753_v55 = vadd.f32 %v4180_v52, %v4545_v30  ;;  %923 = vadd.xlane.f32.xlu0 %v891_v51  ;;  %v894_v56 = vmul.f32 %v4551_v53, %v858_v50 }
 0x26e   :  { %v744_v57 = vpop.f32.mrf.mxu0 }
 0x26f   :  { %v861_v58 = vmax.f32 %v753_v55, 0.0  ;;  %v745_v59 = vadd.f32 %v4545_v30, %v744_v57  ;;  %929 = vadd.xlane.f32.xlu1 %v894_v56  ;;  %v892_v60 = vmul.f32 %v4551_v53, %v856_v54 }
 0x270   :  { %v4181_v61 = vpop.f32.mrf.mxu0 }
 0x271   :  { %v756_v62 = vadd.f32 %v4181_v61, %v4545_v30  ;;  %925 = vadd.xlane.f32.xlu0 %v892_v60  ;;  %v859_v0 = vmax.f32 %v745_v59, 0.0  ;;  %v897_v5 = vmul.f32 %v4551_v53, %v861_v58 }
 0x272   :  { %v747_v63 = vpop.f32.mrf.mxu0 }
 0x273   :  { %v862_v2 = vmax.f32 %v756_v62, 0.0  ;;  %v748_v4 = vadd.f32 %v4545_v30, %v747_v63  ;;  %v895_v14 = vmul.f32 %v4551_v53, %v859_v0 }
 0x274   :  { %v4184_v6 = vpop.f32.mrf.mxu0 }
 0x275   :  { %v860_v7 = vmax.f32 %v748_v4, 0.0  ;;  %v769_v8 = vadd.f32 %v4184_v6, %v4545_v30  ;;  %935 = vadd.xlane.f32.xlu0 %v897_v5  ;;  %v898_v9 = vmul.f32 %v4551_v53, %v862_v2 }
 0x276   :  { %v760_v10 = vpop.f32.mrf.mxu0 }
 0x277   :  { %v865_v11 = vmax.f32 %v769_v8, 0.0  ;;  %v761_v13 = vadd.f32 %v4545_v30, %v760_v10  ;;  %937 = vadd.xlane.f32.xlu1 %v898_v9  ;;  %v896_v17 = vmul.f32 %v4551_v53, %v860_v7 }
 0x278   :  { %v4185_v15 = vpop.f32.mrf.mxu0 }
 0x279   :  { %v772_v16 = vadd.f32 %v4185_v15, %v4545_v30  ;;  %931 = vadd.xlane.f32.xlu0 %v895_v14  ;;  %v863_v19 = vmax.f32 %v761_v13, 0.0  ;;  %v901_v23 = vmul.f32 %v4551_v53, %v865_v11 }
 0x27a   :  { %v763_v18 = vpop.f32.mrf.mxu0 }
 0x27b   :  { %v866_v20 = vmax.f32 %v772_v16, 0.0  ;;  %v764_v22 = vadd.f32 %v4545_v30, %v763_v18  ;;  %933 = vadd.xlane.f32.xlu1 %v896_v17  ;;  %v899_v29 = vmul.f32 %v4551_v53, %v863_v19 }
 0x27c   :  { %v4188_v24 = vpop.f32.mrf.mxu0 }
 0x27d   :  { %v864_v25 = vmax.f32 %v764_v22, 0.0  ;;  %v785_v26 = vadd.f32 %v4188_v24, %v4545_v30  ;;  %943 = vadd.xlane.f32.xlu0 %v901_v23  ;;  %v902_v3 = vmul.f32 %v4551_v53, %v866_v20 }
 0x27e   :  { %v776_v12 = vpop.f32.mrf.mxu0 }
 0x27f   :  { %v869_v27 = vmax.f32 %v785_v26, 0.0  ;;  %v777_v28 = vadd.f32 %v4545_v30, %v776_v12  ;;  %945 = vadd.xlane.f32.xlu1 %v902_v3  ;;  %v900_v33 = vmul.f32 %v4551_v53, %v864_v25 }
 0x280   :  { %v4189_v31 = vpop.f32.mrf.mxu0 }
 0x281   :  { %v788_v32 = vadd.f32 %v4189_v31, %v4545_v30  ;;  %939 = vadd.xlane.f32.xlu0 %v899_v29  ;;  %v867_v35 = vmax.f32 %v777_v28, 0.0  ;;  %v905_v21 = vmul.f32 %v4551_v53, %v869_v27 }
 0x282   :  { %v779_v34 = vpop.f32.mrf.mxu0 }
 0x283   :  { %v870_v36 = vmax.f32 %v788_v32, 0.0  ;;  %v780_v37 = vadd.f32 %v4545_v30, %v779_v34  ;;  %941 = vadd.xlane.f32.xlu1 %v900_v33  ;;  %v903_v43 = vmul.f32 %v4551_v53, %v867_v35 }
 0x284   :  { %v4192_v38 = vpop.f32.mrf.mxu0 }
 0x285   :  { %v868_v39 = vmax.f32 %v780_v37, 0.0  ;;  %v801_v40 = vadd.f32 %v4192_v38, %v4545_v30  ;;  %951 = vadd.xlane.f32.xlu0 %v905_v21  ;;  %v906_v41 = vmul.f32 %v4551_v53, %v870_v36 }
 0x286   :  { %v792_v42 = vpop.f32.mrf.mxu0 }
 0x287   :  { %v873_v44 = vmax.f32 %v801_v40, 0.0  ;;  %v793_v45 = vadd.f32 %v4545_v30, %v792_v42  ;;  %953 = vadd.xlane.f32.xlu1 %v906_v41  ;;  %v904_v48 = vmul.f32 %v4551_v53, %v868_v39 }
 0x288   :  { %v4193_v46 = vpop.f32.mrf.mxu0 }
 0x289   :  { %v804_v47 = vadd.f32 %v4193_v46, %v4545_v30  ;;  %947 = vadd.xlane.f32.xlu0 %v903_v43  ;;  %v871_v50 = vmax.f32 %v793_v45, 0.0  ;;  %v909_v52 = vmul.f32 %v4551_v53, %v873_v44  ;;  %v987_v45 = vld [vmem:[#allocation2] sm:$0x1] }
 0x28a   :  { %v795_v49 = vpop.f32.mrf.mxu0 }
 0x28b   :  { %v874_v1 = vmax.f32 %v804_v47, 0.0  ;;  %v796_v51 = vadd.f32 %v4545_v30, %v795_v49  ;;  %949 = vadd.xlane.f32.xlu1 %v904_v48  ;;  %v907_v61 = vmul.f32 %v4551_v53, %v871_v50 }
 0x28c   :  { %v4196_v54 = vpop.f32.mrf.mxu0 }
 0x28d   :  { %v872_v55 = vmax.f32 %v796_v51, 0.0  ;;  %v817_v56 = vadd.f32 %v4196_v54, %v4545_v30  ;;  %959 = vadd.xlane.f32.xlu0 %v909_v52  ;;  %v910_v57 = vmul.f32 %v4551_v53, %v874_v1 }
 0x28e   :  { %v808_v58 = vpop.f32.mrf.mxu0 }
 0x28f   :  { %v877_v59 = vmax.f32 %v817_v56, 0.0  ;;  %v809_v60 = vadd.f32 %v4545_v30, %v808_v58  ;;  %961 = vadd.xlane.f32.xlu1 %v910_v57  ;;  %v908_v0 = vmul.f32 %v4551_v53, %v872_v55 }
 0x290   :  { %v4197_v62 = vpop.f32.mrf.mxu0 }
 0x291   :  { %v820_v63 = vadd.f32 %v4197_v62, %v4545_v30  ;;  %955 = vadd.xlane.f32.xlu0 %v907_v61  ;;  %v875_v4 = vmax.f32 %v809_v60, 0.0  ;;  %v913_v7 = vmul.f32 %v4551_v53, %v877_v59 }
 0x292   :  { %v811_v2 = vpop.f32.mrf.mxu0 }
 0x293   :  { %v878_v5 = vmax.f32 %v820_v63, 0.0  ;;  %v812_v6 = vadd.f32 %v4545_v30, %v811_v2  ;;  %957 = vadd.xlane.f32.xlu1 %v908_v0  ;;  %v911_v15 = vmul.f32 %v4551_v53, %v875_v4  ;;  %v993_v63 = vlaneseq }
 0x294   :  { %v4200_v8 = vpop.f32.mrf.mxu0 }
 0x295   :  { %v876_v9 = vmax.f32 %v812_v6, 0.0  ;;  %967 = vadd.xlane.f32.xlu0 %v913_v7  ;;  %v914_v10 = vmul.f32 %v4551_v53, %v878_v5  ;;  %v833_v11 = vadd.f32 %v4200_v8, %v4545_v30  ;;  %v4617_v4 = vshrl.u32 %v993_v63, 7 }
 0x296   :  { %v824_v13 = vpop.f32.mrf.mxu0  ;;  %v4253_v6 = vmov 1966171168   ;;  %vm3957_vm0 = vcmp.lt.s32.totalorder %v993_v63, 256 }
 0x297   :  { %969 = vadd.xlane.f32.xlu1 %v914_v10  ;;  %v881_v14 = vmax.f32 %v833_v11, 0.0  ;;  %v825_v16 = vadd.f32 %v4545_v30, %v824_v13  ;;  %v912_v18 = vmul.f32 %v4551_v53, %v876_v9  ;;  %v2090_v7 = vunpack.c.l.s4 %v4253_v6 }
 0x298   :  { %v4201_v17 = vpop.f32.mrf.mxu0  ;;  %v4620_v9 = vsub.s32 0, %v4617_v4 }
 0x299   :  { %963 = vadd.xlane.f32.xlu0 %v911_v15  ;;  %v836_v19 = vadd.f32 %v4201_v17, %v4545_v30  ;;  %v879_v22 = vmax.f32 %v825_v16, 0.0  ;;  %v917_v23 = vmul.f32 %v4551_v53, %v881_v14  ;;  %v2091_v11 = vunpack.c.0.s8 %v2090_v7 }
 0x29a   :  { %v827_v20 = vpop.f32.mrf.mxu0  ;;  %v4623_v14 = vsub.s32 1, %v4617_v4  ;;  %v4629_v16 = vsub.s32 2, %v4617_v4  ;;  %v4632_v17 = vsub.s32 3, %v4617_v4 }
 0x29b   :  { %965 = vadd.xlane.f32.xlu1 %v912_v18  ;;  %v828_v24 = vadd.f32 %v4545_v30, %v827_v20  ;;  %v882_v12 = vmax.f32 %v836_v19, 0.0  ;;  %v915_v28 = vmul.f32 %v4551_v53, %v879_v22  ;;  %v4635_v18 = vsub.s32 4, %v4617_v4 }
 0x29c   :  { %v4204_v25 = vpop.f32.mrf.mxu0  ;;  %v4638_v20 = vsub.s32 5, %v4617_v4  ;;  %v4641_v22 = vsub.s32 6, %v4617_v4 }
 0x29d   :  { %v880_v26 = vmax.f32 %v828_v24, 0.0  ;;  %v849_v3 = vadd.f32 %v4204_v25, %v4545_v30  ;;  %v918_v21 = vmul.f32 %v4551_v53, %v882_v12  ;;  %v4647_v24 = vsub.s32 %v2091_v11, %v4617_v4 }
 0x29e   :  { %v840_v27 = vpop.f32.mrf.mxu0 }
 0x29f   :  { %975 = vadd.xlane.f32.xlu1 %v917_v23  ;;  %v885_v29 = vmax.f32 %v849_v3, 0.0  ;;  %v916_v31 = vmul.f32 %v4551_v53, %v880_v26  ;;  %v841_v32 = vadd.f32 %v4545_v30, %v840_v27  ;;  %v4644_v23 = vsub.s32 7, %v4617_v4 }
 0x2a0   :  { %v4205_v33 = vpop.f32.mrf.mxu0 }
 0x2a1   :  { %v883_v34 = vmax.f32 %v841_v32, 0.0  ;;  %v921_v35 = vmul.f32 %v4551_v53, %v885_v29  ;;  %v852_v36 = vadd.f32 %v4205_v33, %v4545_v30 }
 0x2a2   :  { %v843_v37 = vpop.f32.mrf.mxu0 }
 0x2a3   :  { %971 = vadd.xlane.f32.xlu1 %v915_v28  ;;  %v886_v38 = vmax.f32 %v852_v36, 0.0  ;;  %v919_v39 = vmul.f32 %v4551_v53, %v883_v34  ;;  %v844_v40 = vadd.f32 %v4545_v30, %v843_v37 }
 0x2a5   :  { %v884_v41 = vmax.f32 %v844_v40, 0.0  ;;  %v922_v42 = vmul.f32 %v4551_v53, %v886_v38 }
 0x2a7   :  { %977 = vadd.xlane.f32.xlu1 %v918_v21  ;;  %v920_v44 = vmul.f32 %v4551_v53, %v884_v41 }
 0x2ab   :  { %973 = vadd.xlane.f32.xlu1 %v916_v31 }
 0x2af   :  { %983 = vadd.xlane.f32.xlu1 %v921_v35  ;;  %990 = vperm.xlu0 %4211, %v987_v45  }
 0x2b3   :  { %979 = vadd.xlane.f32.xlu1 %v919_v39 }
 0x2b7   :  { %985 = vadd.xlane.f32.xlu1 %v922_v42 }
 0x2bb   :  { %981 = vadd.xlane.f32.xlu1 %v920_v44 }
 0x2f4   :  { %v928_v43 = vpop.xlane.xlu1 %927 }
 0x2f6   :  { %v924_v46 = vpop.xlane.xlu0 %923 }
 0x2f8   :  { %v930_v48 = vpop.xlane.xlu1 %929 }
 0x2fa   :  { %v926_v47 = vpop.xlane.xlu0 %925 }
 0x2fe   :  { %v936_v49 = vpop.xlane.xlu0 %935 }
 0x300   :  { %v938_v50 = vpop.xlane.xlu1 %937 }
 0x302   :  { %v932_v30 = vpop.xlane.xlu0 %931 }
 0x304   :  { %v934_v1 = vpop.xlane.xlu1 %933 }
 0x306   :  { %v944_v51 = vpop.xlane.xlu0 %943 }
 0x308   :  { %v946_v52 = vpop.xlane.xlu1 %945 }
 0x30a   :  { %v940_v54 = vpop.xlane.xlu0 %939 }
 0x30c   :  { %v942_v55 = vpop.xlane.xlu1 %941 }
 0x30e   :  { %v952_v53 = vpop.xlane.xlu0 %951 }
 0x310   :  { %v954_v56 = vpop.xlane.xlu1 %953 }
 0x312   :  { %v948_v57 = vpop.xlane.xlu0 %947 }
 0x314   :  { %v950_v58 = vpop.xlane.xlu1 %949 }
 0x316   :  { %v960_v59 = vpop.xlane.xlu0 %959 }
 0x318   :  { %v962_v60 = vpop.xlane.xlu1 %961 }
 0x31a   :  { %v956_v61 = vpop.xlane.xlu0 %955 }
 0x31c   :  { %v958_v62 = vpop.xlane.xlu1 %957 }
 0x31e   :  { %v968_v0 = vpop.xlane.xlu0 %967 }
 0x320   :  { %v970_v2 = vpop.xlane.xlu1 %969 }
 0x322   :  { %v964_v8 = vpop.xlane.xlu0 %963 }
 0x324   :  { %v966_v5 = vpop.xlane.xlu1 %965 }
 0x328   :  { %v976_v10 = vpop.xlane.xlu1 %975 }
 0x32a   :  { %v991_v13 = vpop.permute.xlu0 %990 }
 0x32b   :  { %v4626_v15 = vrot.slane %v991_v13, %v4620_v9 }
 0x32c   :  { %v972_v19 = vpop.xlane.xlu1 %971 }
 0x32d   :  { %v4650_v25 = vadd.f32 %v4626_v15, %v924_v46  ;;  %v4653_v26 = vadd.f32 %v4626_v15, %v926_v47  ;;  %v999_v3 = vadd.f32 %v4626_v15, %v928_v43  ;;  %v4657_v12 = vadd.f32 %v4626_v15, %v930_v48 }
 0x32e   :  { %v4660_v27 = vadd.f32 %v4626_v15, %v932_v30  ;;  %v4663_v28 = vadd.f32 %v4626_v15, %v934_v1  ;;  %v4666_v29 = vadd.f32 %v4626_v15, %v936_v49  ;;  %v4669_v31 = vadd.f32 %v4626_v15, %v938_v50 }
 0x32f   :  { %v4672_v32 = vadd.f32 %v4626_v15, %v940_v54  ;;  %v4675_v33 = vadd.f32 %v4626_v15, %v942_v55  ;;  %v4678_v34 = vadd.f32 %v4626_v15, %v944_v51  ;;  %v4681_v35 = vadd.f32 %v4626_v15, %v946_v52 }
 0x330   :  { %v4684_v36 = vadd.f32 %v4626_v15, %v948_v57  ;;  %v4687_v37 = vadd.f32 %v4626_v15, %v950_v58  ;;  %v4690_v21 = vadd.f32 %v4626_v15, %v952_v53  ;;  %v4693_v38 = vadd.f32 %v4626_v15, %v954_v56  ;;  %v978_v39 = vpop.xlane.xlu1 %977 }
 0x331   :  { %v4696_v40 = vadd.f32 %v4626_v15, %v956_v61  ;;  %v4699_v41 = vadd.f32 %v4626_v15, %v958_v62  ;;  %v4702_v42 = vadd.f32 %v4626_v15, %v960_v59  ;;  %v4705_v44 = vadd.f32 %v4626_v15, %v962_v60 }
 0x332   :  { %v4708_v45 = vadd.f32 %v4626_v15, %v964_v8  ;;  %v4711_v43 = vadd.f32 %v4626_v15, %v966_v5  ;;  %v4714_v46 = vadd.f32 %v4626_v15, %v968_v0  ;;  %v4717_v47 = vadd.f32 %v4626_v15, %v970_v2 }
 0x333   :  { %v4720_v48 = vadd.f32 %v4626_v15, %v976_v10  ;;  %v4723_v49 = vadd.f32 %v4626_v15, %v972_v19  ;;  %v4726_v50 = vadd.f32 %v4626_v15, %v978_v39  ;;  %v1128_v30 = vrot.slane %v999_v3, %v4620_v9 }
 0x334   :  { %v974_v1 = vpop.xlane.xlu1 %973  ;;  %v1132_v51 = vrot.slane %v999_v3, %v4623_v14  ;;  %v1136_v52 = vrot.slane %v999_v3, %v4629_v16  ;;  %v1140_v54 = vrot.slane %v999_v3, %v4632_v17  ;;  %v1144_v55 = vrot.slane %v999_v3, %v4635_v18 }
 0x335   :  { %v4734_v53 = vadd.f32 %v4626_v15, %v974_v1  ;;  %v1148_v56 = vrot.slane %v999_v3, %v4638_v20  ;;  %v1152_v57 = vrot.slane %v999_v3, %v4641_v22  ;;  %v1156_v58 = vrot.slane %v999_v3, %v4644_v23 }
 0x336   :  { %v2183_v59 = vcombine.low %v1128_v30, %v1132_v51  ;;  %v2184_v60 = vcombine.low %v1136_v52, %v1140_v54  ;;  %v1064_v61 = vrot.slane %v4650_v25, %v4620_v9  ;;  %v1068_v62 = vrot.slane %v4650_v25, %v4623_v14 }
 0x337   :  { %v2185_v0 = vcombine.low %v1144_v55, %v1148_v56  ;;  %v2186_v2 = vcombine.low %v1152_v57, %v1156_v58  ;;  %v1072_v5 = vrot.slane %v4650_v25, %v4629_v16  ;;  %v1076_v6 = vrot.slane %v4650_v25, %v4632_v17 }
 0x338   :  { %v984_v7 = vpop.xlane.xlu1 %983  ;;  %v2193_v8 = vrot.slane %v2183_v59, %v4647_v24  ;;  %v2200_v10 = vrot.slane %v2184_v60, %v4647_v24  ;;  %v1080_v11 = vrot.slane %v4650_v25, %v4635_v18  ;;  %v1084_v13 = vrot.slane %v4650_v25, %v4638_v20 }
 0x339   :  { %v4754_v19 = vadd.f32 %v4626_v15, %v984_v7  ;;  %v2207_v3 = vrot.slane %v2185_v0, %v4647_v24  ;;  %v2214_v39 = vrot.slane %v2186_v2, %v4647_v24  ;;  %v1088_v30 = vrot.slane %v4650_v25, %v4641_v22 }
 0x33a   :  { %v2215_v1 = vcombine.low %v2193_v8, %v2200_v10  ;;  %v1092_v51 = vrot.slane %v4650_v25, %v4644_v23  ;;  %v2085_v52 = vcombine.low %v1064_v61, %v1068_v62  ;;  %v2086_v54 = vcombine.low %v1072_v5, %v1076_v6 }
 0x33b   :  { %v2216_v55 = vcombine.low %v2207_v3, %v2214_v39  ;;  %v2087_v56 = vcombine.low %v1080_v11, %v1084_v13  ;;  %v1160_v57 = vrot.slane %v4657_v12, %v4620_v9  ;;  %v1164_v58 = vrot.slane %v4657_v12, %v4623_v14 }
 0x33c   :  { %v2223_v59 = vrot.slane %v2215_v1, %v4647_v24  ;;  %v2088_v60 = vcombine.low %v1088_v30, %v1092_v51  ;;  %v2095_v0 = vrot.slane %v2085_v52, %v4647_v24  ;;  %v2102_v2 = vrot.slane %v2086_v54, %v4647_v24  ;;  %v980_v7 = vpop.xlane.xlu1 %979 }
 0x33d   :  { %v2230_v25 = vrot.slane %v2216_v55, %v4647_v24  ;;  %v2109_v61 = vrot.slane %v2087_v56, %v4647_v24  ;;  %v4772_v62 = vadd.f32 %v4626_v15, %v980_v7  ;;  %v1168_v5 = vrot.slane %v4657_v12, %v4629_v16 }
 0x33e   :  { %v2116_v6 = vrot.slane %v2088_v60, %v4647_v24  ;;  %v2117_v8 = vcombine.low %v2095_v0, %v2102_v2  ;;  %v1172_v10 = vrot.slane %v4657_v12, %v4632_v17  ;;  %v1176_v11 = vrot.slane %v4657_v12, %v4635_v18 }
 0x33f   :  { %v2231_v13 = vcombine.low %v2223_v59, %v2230_v25  ;;  %v1180_v3 = vrot.slane %v4657_v12, %v4638_v20  ;;  %v1184_v39 = vrot.slane %v4657_v12, %v4641_v22  ;;  %v1188_v30 = vrot.slane %v4657_v12, %v4644_v23 }
 0x340   :  { %v2118_v1 = vcombine.low %v2109_v61, %v2116_v6  ;;  %v2125_v51 = vrot.slane %v2117_v8, %v4647_v24  ;;  %v2232_v52 = vcombine.low %v1160_v57, %v1164_v58  ;;  %v2233_v54 = vcombine.low %v1168_v5, %v1172_v10  ;;  %v986_v5 = vpop.xlane.xlu1 %985 }
 0x341   :  { %3660 = vperm.xlu0 %4211, %v2231_v13   ;;  %v2234_v55 = vcombine.low %v1176_v11, %v1180_v3  ;;  %v2235_v56 = vcombine.low %v1184_v39, %v1188_v30  ;;  %v1640_v59 = vrot.slane %v4702_v42, %v4620_v9  ;;  %v1644_v60 = vrot.slane %v4702_v42, %v4623_v14 }
 0x342   :  { %v2132_v0 = vrot.slane %v2118_v1, %v4647_v24  ;;  %v2242_v2 = vrot.slane %v2232_v52, %v4647_v24  ;;  %v2249_v12 = vrot.slane %v2233_v54, %v4647_v24  ;;  %v1648_v7 = vrot.slane %v4702_v42, %v4629_v16 }
 0x343   :  { %v2256_v57 = vrot.slane %v2234_v55, %v4647_v24  ;;  %v2263_v58 = vrot.slane %v2235_v56, %v4647_v24  ;;  %v1652_v25 = vrot.slane %v4702_v42, %v4632_v17  ;;  %v1656_v61 = vrot.slane %v4702_v42, %v4635_v18 }
 0x344   :  { %v2133_v6 = vcombine.low %v2125_v51, %v2132_v0  ;;  %v2264_v8 = vcombine.low %v2242_v2, %v2249_v12  ;;  %v1660_v10 = vrot.slane %v4702_v42, %v4638_v20  ;;  %v1664_v11 = vrot.slane %v4702_v42, %v4641_v22 }
 0x345   :  { %v2265_v13 = vcombine.low %v2256_v57, %v2263_v58  ;;  %v1668_v3 = vrot.slane %v4702_v42, %v4644_v23  ;;  %v2967_v39 = vcombine.low %v1640_v59, %v1644_v60  ;;  %v2968_v30 = vcombine.low %v1648_v7, %v1652_v25 }
 0x346   :  { %3654 = vperm.xlu1 %4212, %v2133_v6   ;;  %v2272_v1 = vrot.slane %v2264_v8, %v4647_v24  ;;  %v2969_v52 = vcombine.low %v1656_v61, %v1660_v10  ;;  %v4811_v54 = vadd.f32 %v4626_v15, %v986_v5  ;;  %v1096_v51 = vrot.slane %v4653_v26, %v4620_v9 }
 0x347   :  { %v2279_v55 = vrot.slane %v2265_v13, %v4647_v24  ;;  %v2970_v56 = vcombine.low %v1664_v11, %v1668_v3  ;;  %v2977_v0 = vrot.slane %v2967_v39, %v4647_v24  ;;  %v2984_v2 = vrot.slane %v2968_v30, %v4647_v24 }
 0x348   :  { %v2991_v42 = vrot.slane %v2969_v52, %v4647_v24  ;;  %v1100_v59 = vrot.slane %v4653_v26, %v4623_v14  ;;  %v1104_v60 = vrot.slane %v4653_v26, %v4629_v16  ;;  %v1108_v12 = vrot.slane %v4653_v26, %v4632_v17 }
 0x349   :  { %v2280_v7 = vcombine.low %v2272_v1, %v2279_v55  ;;  %v2998_v57 = vrot.slane %v2970_v56, %v4647_v24  ;;  %v2999_v58 = vcombine.low %v2977_v0, %v2984_v2  ;;  %v1112_v25 = vrot.slane %v4653_v26, %v4635_v18 }
 0x34a   :  { %v1116_v61 = vrot.slane %v4653_v26, %v4638_v20  ;;  %v1120_v5 = vrot.slane %v4653_v26, %v4641_v22  ;;  %v1124_v6 = vrot.slane %v4653_v26, %v4644_v23  ;;  %v2134_v8 = vcombine.low %v1096_v51, %v1100_v59 }
 0x34b   :  { %3663 = vperm.xlu0 %4211, %v2280_v7   ;;  %v3000_v10 = vcombine.low %v2991_v42, %v2998_v57  ;;  %v3007_v11 = vrot.slane %v2999_v58, %v4647_v24  ;;  %v2135_v13 = vcombine.low %v1104_v60, %v1108_v12  ;;  %v1576_v3 = vrot.slane %v4696_v40, %v4620_v9  ;;  %v982_v60 = vpop.xlane.xlu1 %981 }
 0x34c   :  { %v2136_v39 = vcombine.low %v1112_v25, %v1116_v61  ;;  %v2137_v30 = vcombine.low %v1120_v5, %v1124_v6  ;;  %v2144_v1 = vrot.slane %v2134_v8, %v4647_v24  ;;  %v1580_v52 = vrot.slane %v4696_v40, %v4623_v14 }
 0x34d   :  { %v3014_v55 = vrot.slane %v3000_v10, %v4647_v24  ;;  %v2151_v26 = vrot.slane %v2135_v13, %v4647_v24  ;;  %v1584_v51 = vrot.slane %v4696_v40, %v4629_v16  ;;  %v1588_v56 = vrot.slane %v4696_v40, %v4632_v17 }
 0x34e   :  { %v2158_v0 = vrot.slane %v2136_v39, %v4647_v24  ;;  %v2165_v2 = vrot.slane %v2137_v30, %v4647_v24  ;;  %v1592_v42 = vrot.slane %v4696_v40, %v4635_v18  ;;  %v1596_v59 = vrot.slane %v4696_v40, %v4638_v20 }
 0x34f   :  { %v3015_v12 = vcombine.low %v3007_v11, %v3014_v55  ;;  %v2166_v7 = vcombine.low %v2144_v1, %v2151_v26  ;;  %v1600_v57 = vrot.slane %v4696_v40, %v4641_v22  ;;  %v1604_v58 = vrot.slane %v4696_v40, %v4644_v23 }
 0x350   :  { %v2167_v25 = vcombine.low %v2158_v0, %v2165_v2  ;;  %v2869_v61 = vcombine.low %v1576_v3, %v1580_v52  ;;  %v2870_v5 = vcombine.low %v1584_v51, %v1588_v56  ;;  %v2871_v6 = vcombine.low %v1592_v42, %v1596_v59 }
 0x351   :  { %3708 = vperm.xlu1 %4212, %v3015_v12   ;;  %v2174_v8 = vrot.slane %v2166_v7, %v4647_v24  ;;  %v2872_v10 = vcombine.low %v1600_v57, %v1604_v58  ;;  %v4858_v13 = vadd.f32 %v4626_v15, %v982_v60  ;;  %v1256_v11 = vrot.slane %v4666_v29, %v4620_v9 }
 0x352   :  { %v2181_v39 = vrot.slane %v2167_v25, %v4647_v24  ;;  %v2879_v30 = vrot.slane %v2869_v61, %v4647_v24  ;;  %v2886_v40 = vrot.slane %v2870_v5, %v4647_v24  ;;  %v2893_v3 = vrot.slane %v2871_v6, %v4647_v24 }
 0x353   :  { %v2900_v1 = vrot.slane %v2872_v10, %v4647_v24  ;;  %v1260_v52 = vrot.slane %v4666_v29, %v4623_v14  ;;  %v1264_v15 = vrot.slane %v4666_v29, %v4629_v16  ;;  %v1268_v55 = vrot.slane %v4666_v29, %v4632_v17 }
 0x354   :  { %v2182_v26 = vcombine.low %v2174_v8, %v2181_v39  ;;  %v2901_v51 = vcombine.low %v2879_v30, %v2886_v40  ;;  %v1272_v56 = vrot.slane %v4666_v29, %v4635_v18  ;;  %v1276_v0 = vrot.slane %v4666_v29, %v4638_v20 }
 0x355   :  { %v2902_v2 = vcombine.low %v2893_v3, %v2900_v1  ;;  %v1280_v42 = vrot.slane %v4666_v29, %v4641_v22  ;;  %v1284_v59 = vrot.slane %v4666_v29, %v4644_v23  ;;  %v2379_v60 = vcombine.low %v1256_v11, %v1260_v52 }
 0x356   :  { %3657 = vperm.xlu0 %4211, %v2182_v26   ;;  %v2909_v12 = vrot.slane %v2901_v51, %v4647_v24  ;;  %v2380_v7 = vcombine.low %v1264_v15, %v1268_v55  ;;  %v2381_v57 = vcombine.low %v1272_v56, %v1276_v0  ;;  %v1672_v58 = vrot.slane %v4705_v44, %v4620_v9 }
 0x357   :  { %v2916_v25 = vrot.slane %v2902_v2, %v4647_v24  ;;  %v2382_v61 = vcombine.low %v1280_v42, %v1284_v59  ;;  %v2389_v5 = vrot.slane %v2379_v60, %v4647_v24  ;;  %v1676_v6 = vrot.slane %v4705_v44, %v4623_v14 }
 0x358   :  { %v2396_v8 = vrot.slane %v2380_v7, %v4647_v24  ;;  %v2403_v29 = vrot.slane %v2381_v57, %v4647_v24  ;;  %v1680_v10 = vrot.slane %v4705_v44, %v4629_v16  ;;  %v1684_v11 = vrot.slane %v4705_v44, %v4632_v17 }
 0x359   :  { %v2917_v39 = vcombine.low %v2909_v12, %v2916_v25  ;;  %v2410_v30 = vrot.slane %v2382_v61, %v4647_v24  ;;  %v1688_v40 = vrot.slane %v4705_v44, %v4635_v18  ;;  %v1692_v3 = vrot.slane %v4705_v44, %v4638_v20 }
 0x35a   :  { %v2411_v1 = vcombine.low %v2389_v5, %v2396_v8  ;;  %v1696_v52 = vrot.slane %v4705_v44, %v4641_v22  ;;  %v1700_v15 = vrot.slane %v4705_v44, %v4644_v23  ;;  %v3016_v55 = vcombine.low %v1672_v58, %v1676_v6 }
 0x35b   :  { %3702 = vperm.xlu1 %4212, %v2917_v39   ;;  %v2412_v26 = vcombine.low %v2403_v29, %v2410_v30  ;;  %v3017_v51 = vcombine.low %v1680_v10, %v1684_v11  ;;  %v3018_v56 = vcombine.low %v1688_v40, %v1692_v3  ;;  %v1192_v0 = vrot.slane %v4660_v27, %v4620_v9 }
 0x35c   :  { %v2419_v2 = vrot.slane %v2411_v1, %v4647_v24  ;;  %v3019_v42 = vcombine.low %v1696_v52, %v1700_v15  ;;  %v3026_v59 = vrot.slane %v3016_v55, %v4647_v24  ;;  %v1196_v60 = vrot.slane %v4660_v27, %v4623_v14 }
 0x35d   :  { %v2426_v12 = vrot.slane %v2412_v26, %v4647_v24  ;;  %v3033_v44 = vrot.slane %v3017_v51, %v4647_v24  ;;  %v3040_v7 = vrot.slane %v3018_v56, %v4647_v24  ;;  %v1200_v57 = vrot.slane %v4660_v27, %v4629_v16 }
 0x35e   :  { %v3047_v58 = vrot.slane %v3019_v42, %v4647_v24  ;;  %v1204_v25 = vrot.slane %v4660_v27, %v4632_v17  ;;  %v1208_v61 = vrot.slane %v4660_v27, %v4635_v18  ;;  %v1212_v5 = vrot.slane %v4660_v27, %v4638_v20 }
 0x35f   :  { %v2427_v6 = vcombine.low %v2419_v2, %v2426_v12  ;;  %v3048_v8 = vcombine.low %v3026_v59, %v3033_v44  ;;  %v1216_v29 = vrot.slane %v4660_v27, %v4641_v22  ;;  %v1220_v10 = vrot.slane %v4660_v27, %v4644_v23 }
 0x360   :  { %v3049_v11 = vcombine.low %v3040_v7, %v3047_v58  ;;  %v2281_v39 = vcombine.low %v1192_v0, %v1196_v60  ;;  %v2282_v30 = vcombine.low %v1200_v57, %v1204_v25  ;;  %v2283_v40 = vcombine.low %v1208_v61, %v1212_v5 }
 0x361   :  { %3672 = vperm.xlu0 %4211, %v2427_v6   ;;  %v3056_v3 = vrot.slane %v3048_v8, %v4647_v24  ;;  %v2284_v1 = vcombine.low %v1216_v29, %v1220_v10  ;;  %v1768_v52 = vrot.slane %v4714_v46, %v4620_v9  ;;  %v1772_v15 = vrot.slane %v4714_v46, %v4623_v14 }
 0x362   :  { %v3063_v55 = vrot.slane %v3049_v11, %v4647_v24  ;;  %v2291_v26 = vrot.slane %v2281_v39, %v4647_v24  ;;  %v2298_v27 = vrot.slane %v2282_v30, %v4647_v24  ;;  %v2305_v51 = vrot.slane %v2283_v40, %v4647_v24 }
 0x363   :  { %v2312_v56 = vrot.slane %v2284_v1, %v4647_v24  ;;  %v1776_v0 = vrot.slane %v4714_v46, %v4629_v16  ;;  %v1780_v2 = vrot.slane %v4714_v46, %v4632_v17  ;;  %v1784_v42 = vrot.slane %v4714_v46, %v4635_v18 }
 0x364   :  { %v3064_v59 = vcombine.low %v3056_v3, %v3063_v55  ;;  %v2313_v60 = vcombine.low %v2291_v26, %v2298_v27  ;;  %v1788_v12 = vrot.slane %v4714_v46, %v4638_v20  ;;  %v1792_v44 = vrot.slane %v4714_v46, %v4641_v22 }
 0x365   :  { %v2314_v7 = vcombine.low %v2305_v51, %v2312_v56  ;;  %v1796_v57 = vrot.slane %v4714_v46, %v4644_v23  ;;  %v3163_v58 = vcombine.low %v1768_v52, %v1772_v15  ;;  %v3164_v25 = vcombine.low %v1776_v0, %v1780_v2 }
 0x366   :  { %3711 = vperm.xlu1 %4212, %v3064_v59   ;;  %v2321_v61 = vrot.slane %v2313_v60, %v4647_v24  ;;  %v3165_v5 = vcombine.low %v1784_v42, %v1788_v12  ;;  %v1288_v6 = vrot.slane %v4669_v31, %v4620_v9  ;;  %v1292_v8 = vrot.slane %v4669_v31, %v4623_v14 }
 0x367   :  { %v2328_v29 = vrot.slane %v2314_v7, %v4647_v24  ;;  %v3166_v10 = vcombine.low %v1792_v44, %v1796_v57  ;;  %v3173_v11 = vrot.slane %v3163_v58, %v4647_v24  ;;  %v3180_v39 = vrot.slane %v3164_v25, %v4647_v24 }
 0x368   :  { %v3187_v46 = vrot.slane %v3165_v5, %v4647_v24  ;;  %v1296_v30 = vrot.slane %v4669_v31, %v4629_v16  ;;  %v1300_v40 = vrot.slane %v4669_v31, %v4632_v17  ;;  %v1304_v3 = vrot.slane %v4669_v31, %v4635_v18 }
 0x369   :  { %v2329_v1 = vcombine.low %v2321_v61, %v2328_v29  ;;  %v3194_v52 = vrot.slane %v3166_v10, %v4647_v24  ;;  %v3195_v15 = vcombine.low %v3173_v11, %v3180_v39  ;;  %v1308_v55 = vrot.slane %v4669_v31, %v4638_v20 }
 0x36a   :  { %v1312_v26 = vrot.slane %v4669_v31, %v4641_v22  ;;  %v1316_v27 = vrot.slane %v4669_v31, %v4644_v23  ;;  %v2428_v51 = vcombine.low %v1288_v6, %v1292_v8  ;;  %v2429_v56 = vcombine.low %v1296_v30, %v1300_v40 }
 0x36b   :  { %3666 = vperm.xlu0 %4211, %v2329_v1   ;;  %v3196_v0 = vcombine.low %v3187_v46, %v3194_v52  ;;  %v3203_v2 = vrot.slane %v3195_v15, %v4647_v24  ;;  %v2430_v42 = vcombine.low %v1304_v3, %v1308_v55  ;;  %v1704_v59 = vrot.slane %v4708_v45, %v4620_v9 }
 0x36c   :  { %v2431_v60 = vcombine.low %v1312_v26, %v1316_v27  ;;  %v2438_v12 = vrot.slane %v2428_v51, %v4647_v24  ;;  %v2445_v44 = vrot.slane %v2429_v56, %v4647_v24  ;;  %v1708_v7 = vrot.slane %v4708_v45, %v4623_v14 }
 0x36d   :  { %v3210_v31 = vrot.slane %v3196_v0, %v4647_v24  ;;  %v2452_v57 = vrot.slane %v2430_v42, %v4647_v24  ;;  %v1712_v58 = vrot.slane %v4708_v45, %v4629_v16  ;;  %v1716_v25 = vrot.slane %v4708_v45, %v4632_v17 }
 0x36e   :  { %v2459_v61 = vrot.slane %v2431_v60, %v4647_v24  ;;  %v2460_v5 = vcombine.low %v2438_v12, %v2445_v44  ;;  %v1720_v6 = vrot.slane %v4708_v45, %v4635_v18  ;;  %v1724_v8 = vrot.slane %v4708_v45, %v4638_v20 }
 0x36f   :  { %v3211_v29 = vcombine.low %v3203_v2, %v3210_v31  ;;  %v1728_v10 = vrot.slane %v4708_v45, %v4641_v22  ;;  %v1732_v11 = vrot.slane %v4708_v45, %v4644_v23  ;;  %v3065_v39 = vcombine.low %v1704_v59, %v1708_v7 }
 0x370   :  { %v2461_v46 = vcombine.low %v2452_v57, %v2459_v61  ;;  %v2468_v30 = vrot.slane %v2460_v5, %v4647_v24  ;;  %v3066_v40 = vcombine.low %v1712_v58, %v1716_v25  ;;  %v3067_v3 = vcombine.low %v1720_v6, %v1724_v8 }
 0x371   :  { %3720 = vperm.xlu1 %4212, %v3211_v29   ;;  %v3068_v1 = vcombine.low %v1728_v10, %v1732_v11  ;;  %v3075_v52 = vrot.slane %v3065_v39, %v4647_v24  ;;  %v1224_v15 = vrot.slane %v4663_v28, %v4620_v9  ;;  %v1228_v55 = vrot.slane %v4663_v28, %v4623_v14 }
 0x372   :  { %v2475_v26 = vrot.slane %v2461_v46, %v4647_v24  ;;  %v3082_v45 = vrot.slane %v3066_v40, %v4647_v24  ;;  %v3089_v27 = vrot.slane %v3067_v3, %v4647_v24  ;;  %v1232_v51 = vrot.slane %v4663_v28, %v4629_v16 }
 0x373   :  { %v3096_v56 = vrot.slane %v3068_v1, %v4647_v24  ;;  %v1236_v0 = vrot.slane %v4663_v28, %v4632_v17  ;;  %v1240_v2 = vrot.slane %v4663_v28, %v4635_v18  ;;  %v1244_v42 = vrot.slane %v4663_v28, %v4638_v20 }
 0x374   :  { %v2476_v59 = vcombine.low %v2468_v30, %v2475_v26  ;;  %v3097_v60 = vcombine.low %v3075_v52, %v3082_v45  ;;  %v1248_v12 = vrot.slane %v4663_v28, %v4641_v22  ;;  %v1252_v44 = vrot.slane %v4663_v28, %v4644_v23 }
 0x375   :  { %v3098_v7 = vcombine.low %v3089_v27, %v3096_v56  ;;  %v2330_v31 = vcombine.low %v1224_v15, %v1228_v55  ;;  %v2331_v57 = vcombine.low %v1232_v51, %v1236_v0  ;;  %v2332_v58 = vcombine.low %v1240_v2, %v1244_v42 }
 0x376   :  { %3675 = vperm.xlu0 %4211, %v2476_v59   ;;  %v3105_v25 = vrot.slane %v3097_v60, %v4647_v24  ;;  %v2333_v61 = vcombine.low %v1248_v12, %v1252_v44  ;;  %v1800_v5 = vrot.slane %v4717_v47, %v4620_v9  ;;  %v1804_v6 = vrot.slane %v4717_v47, %v4623_v14 }
 0x377   :  { %v3112_v8 = vrot.slane %v3098_v7, %v4647_v24  ;;  %v2340_v29 = vrot.slane %v2330_v31, %v4647_v24  ;;  %v2347_v28 = vrot.slane %v2331_v57, %v4647_v24  ;;  %v2354_v10 = vrot.slane %v2332_v58, %v4647_v24 }
 0x378   :  { %v2361_v11 = vrot.slane %v2333_v61, %v4647_v24  ;;  %v1808_v39 = vrot.slane %v4717_v47, %v4629_v16  ;;  %v1812_v46 = vrot.slane %v4717_v47, %v4632_v17  ;;  %v1816_v30 = vrot.slane %v4717_v47, %v4635_v18 }
 0x379   :  { %v3113_v40 = vcombine.low %v3105_v25, %v3112_v8  ;;  %v2362_v3 = vcombine.low %v2340_v29, %v2347_v28  ;;  %v1820_v1 = vrot.slane %v4717_v47, %v4638_v20  ;;  %v1824_v52 = vrot.slane %v4717_v47, %v4641_v22 }
 0x37a   :  { %v2363_v15 = vcombine.low %v2354_v10, %v2361_v11  ;;  %v1828_v55 = vrot.slane %v4717_v47, %v4644_v23  ;;  %v3212_v26 = vcombine.low %v1800_v5, %v1804_v6  ;;  %v3213_v45 = vcombine.low %v1808_v39, %v1812_v46 }
 0x37b   :  { %3714 = vperm.xlu1 %4212, %v3113_v40   ;;  %v2370_v27 = vrot.slane %v2362_v3, %v4647_v24  ;;  %v3214_v51 = vcombine.low %v1816_v30, %v1820_v1  ;;  %v1384_v56 = vrot.slane %v4678_v34, %v4620_v9  ;;  %v1388_v0 = vrot.slane %v4678_v34, %v4623_v14 }
 0x37c   :  { %v2377_v2 = vrot.slane %v2363_v15, %v4647_v24  ;;  %v3215_v42 = vcombine.low %v1824_v52, %v1828_v55  ;;  %v3222_v59 = vrot.slane %v3212_v26, %v4647_v24  ;;  %v3229_v60 = vrot.slane %v3213_v45, %v4647_v24 }
 0x37d   :  { %v3236_v47 = vrot.slane %v3214_v51, %v4647_v24  ;;  %v1392_v12 = vrot.slane %v4678_v34, %v4629_v16  ;;  %v1396_v44 = vrot.slane %v4678_v34, %v4632_v17  ;;  %v1400_v7 = vrot.slane %v4678_v34, %v4635_v18 }
 0x37e   :  { %v2378_v31 = vcombine.low %v2370_v27, %v2377_v2  ;;  %v3243_v57 = vrot.slane %v3215_v42, %v4647_v24  ;;  %v3244_v58 = vcombine.low %v3222_v59, %v3229_v60  ;;  %v1404_v25 = vrot.slane %v4678_v34, %v4638_v20 }
 0x37f   :  { %v1408_v61 = vrot.slane %v4678_v34, %v4641_v22  ;;  %v1412_v5 = vrot.slane %v4678_v34, %v4644_v23  ;;  %v2575_v6 = vcombine.low %v1384_v56, %v1388_v0  ;;  %v2576_v8 = vcombine.low %v1392_v12, %v1396_v44 }
 0x380   :  { %3669 = vperm.xlu0 %4211, %v2378_v31   ;;  %v3245_v29 = vcombine.low %v3236_v47, %v3243_v57  ;;  %v3252_v28 = vrot.slane %v3244_v58, %v4647_v24  ;;  %v2577_v10 = vcombine.low %v1400_v7, %v1404_v25  ;;  %v1736_v11 = vrot.slane %v4711_v43, %v4620_v9 }
 0x381   :  { %v2578_v39 = vcombine.low %v1408_v61, %v1412_v5  ;;  %v2585_v46 = vrot.slane %v2575_v6, %v4647_v24  ;;  %v2592_v30 = vrot.slane %v2576_v8, %v4647_v24  ;;  %v1740_v40 = vrot.slane %v4711_v43, %v4623_v14 }
 0x382   :  { %v3259_v34 = vrot.slane %v3245_v29, %v4647_v24  ;;  %v2599_v3 = vrot.slane %v2577_v10, %v4647_v24  ;;  %v1744_v1 = vrot.slane %v4711_v43, %v4629_v16  ;;  %v1748_v52 = vrot.slane %v4711_v43, %v4632_v17 }
 0x383   :  { %v2606_v15 = vrot.slane %v2578_v39, %v4647_v24  ;;  %v2607_v55 = vcombine.low %v2585_v46, %v2592_v30  ;;  %v1752_v26 = vrot.slane %v4711_v43, %v4635_v18  ;;  %v1756_v45 = vrot.slane %v4711_v43, %v4638_v20 }
 0x384   :  { %v3260_v27 = vcombine.low %v3252_v28, %v3259_v34  ;;  %v1760_v51 = vrot.slane %v4711_v43, %v4641_v22  ;;  %v1764_v56 = vrot.slane %v4711_v43, %v4644_v23  ;;  %v3114_v0 = vcombine.low %v1736_v11, %v1740_v40 }
 0x385   :  { %v2608_v2 = vcombine.low %v2599_v3, %v2606_v15  ;;  %v2615_v42 = vrot.slane %v2607_v55, %v4647_v24  ;;  %v3115_v59 = vcombine.low %v1744_v1, %v1748_v52  ;;  %v3116_v60 = vcombine.low %v1752_v26, %v1756_v45 }
 0x386   :  { %3723 = vperm.xlu1 %4212, %v3260_v27   ;;  %v3117_v47 = vcombine.low %v1760_v51, %v1764_v56  ;;  %v3124_v12 = vrot.slane %v3114_v0, %v4647_v24  ;;  %v1320_v44 = vrot.slane %v4672_v32, %v4620_v9  ;;  %v1324_v7 = vrot.slane %v4672_v32, %v4623_v14 }
 0x387   :  { %v2622_v31 = vrot.slane %v2608_v2, %v4647_v24  ;;  %v3131_v43 = vrot.slane %v3115_v59, %v4647_v24  ;;  %v3138_v57 = vrot.slane %v3116_v60, %v4647_v24  ;;  %v1328_v58 = vrot.slane %v4672_v32, %v4629_v16 }
 0x388   :  { %v3145_v25 = vrot.slane %v3117_v47, %v4647_v24  ;;  %v1332_v61 = vrot.slane %v4672_v32, %v4632_v17  ;;  %v1336_v5 = vrot.slane %v4672_v32, %v4635_v18  ;;  %v1340_v6 = vrot.slane %v4672_v32, %v4638_v20 }
 0x389   :  { %v2623_v8 = vcombine.low %v2615_v42, %v2622_v31  ;;  %v3146_v29 = vcombine.low %v3124_v12, %v3131_v43  ;;  %v1344_v28 = vrot.slane %v4672_v32, %v4641_v22  ;;  %v1348_v10 = vrot.slane %v4672_v32, %v4644_v23 }
 0x38a   :  { %v3147_v11 = vcombine.low %v3138_v57, %v3145_v25  ;;  %v2477_v39 = vcombine.low %v1320_v44, %v1324_v7  ;;  %v2478_v46 = vcombine.low %v1328_v58, %v1332_v61  ;;  %v2479_v30 = vcombine.low %v1336_v5, %v1340_v6 }
 0x38b   :  { %3684 = vperm.xlu0 %4211, %v2623_v8   ;;  %v3154_v40 = vrot.slane %v3146_v29, %v4647_v24  ;;  %v2480_v34 = vcombine.low %v1344_v28, %v1348_v10  ;;  %v1896_v3 = vrot.slane %v4720_v48, %v4620_v9  ;;  %v1900_v1 = vrot.slane %v4720_v48, %v4623_v14 }
 0x38c   :  { %v3161_v52 = vrot.slane %v3147_v11, %v4647_v24  ;;  %v2487_v15 = vrot.slane %v2477_v39, %v4647_v24  ;;  %v2494_v32 = vrot.slane %v2478_v46, %v4647_v24  ;;  %v2501_v55 = vrot.slane %v2479_v30, %v4647_v24 }
 0x38d   :  { %v2508_v26 = vrot.slane %v2480_v34, %v4647_v24  ;;  %v1904_v45 = vrot.slane %v4720_v48, %v4629_v16  ;;  %v1908_v27 = vrot.slane %v4720_v48, %v4632_v17  ;;  %v1912_v51 = vrot.slane %v4720_v48, %v4635_v18 }
 0x38e   :  { %v3162_v56 = vcombine.low %v3154_v40, %v3161_v52  ;;  %v2509_v0 = vcombine.low %v2487_v15, %v2494_v32  ;;  %v1916_v2 = vrot.slane %v4720_v48, %v4638_v20  ;;  %v1920_v42 = vrot.slane %v4720_v48, %v4641_v22 }
 0x38f   :  { %v2510_v59 = vcombine.low %v2501_v55, %v2508_v26  ;;  %v1924_v60 = vrot.slane %v4720_v48, %v4644_v23  ;;  %v3359_v47 = vcombine.low %v1896_v3, %v1900_v1  ;;  %v3360_v12 = vcombine.low %v1904_v45, %v1908_v27 }
 0x390   :  { %3717 = vperm.xlu1 %4212, %v3162_v56   ;;  %v2517_v44 = vrot.slane %v2509_v0, %v4647_v24  ;;  %v3361_v7 = vcombine.low %v1912_v51, %v1916_v2  ;;  %v1416_v31 = vrot.slane %v4681_v35, %v4620_v9  ;;  %v1420_v43 = vrot.slane %v4681_v35, %v4623_v14 }
 0x391   :  { %v2524_v57 = vrot.slane %v2510_v59, %v4647_v24  ;;  %v3362_v58 = vcombine.low %v1920_v42, %v1924_v60  ;;  %v3369_v25 = vrot.slane %v3359_v47, %v4647_v24  ;;  %v3376_v61 = vrot.slane %v3360_v12, %v4647_v24 }
 0x392   :  { %v3383_v48 = vrot.slane %v3361_v7, %v4647_v24  ;;  %v1424_v5 = vrot.slane %v4681_v35, %v4629_v16  ;;  %v1428_v6 = vrot.slane %v4681_v35, %v4632_v17  ;;  %v1432_v8 = vrot.slane %v4681_v35, %v4635_v18 }
 0x393   :  { %v2525_v29 = vcombine.low %v2517_v44, %v2524_v57  ;;  %v3390_v28 = vrot.slane %v3362_v58, %v4647_v24  ;;  %v3391_v10 = vcombine.low %v3369_v25, %v3376_v61  ;;  %v1436_v11 = vrot.slane %v4681_v35, %v4638_v20 }
 0x394   :  { %v1440_v39 = vrot.slane %v4681_v35, %v4641_v22  ;;  %v1444_v46 = vrot.slane %v4681_v35, %v4644_v23  ;;  %v2624_v30 = vcombine.low %v1416_v31, %v1420_v43  ;;  %v2625_v40 = vcombine.low %v1424_v5, %v1428_v6 }
 0x395   :  { %3678 = vperm.xlu0 %4211, %v2525_v29   ;;  %v3392_v34 = vcombine.low %v3383_v48, %v3390_v28  ;;  %v3399_v3 = vrot.slane %v3391_v10, %v4647_v24  ;;  %v2626_v1 = vcombine.low %v1432_v8, %v1436_v11  ;;  %v1832_v52 = vrot.slane %v4723_v49, %v4620_v9 }
 0x396   :  { %v2627_v15 = vcombine.low %v1440_v39, %v1444_v46  ;;  %v2634_v32 = vrot.slane %v2624_v30, %v4647_v24  ;;  %v2641_v55 = vrot.slane %v2625_v40, %v4647_v24  ;;  %v1836_v26 = vrot.slane %v4723_v49, %v4623_v14 }
 0x397   :  { %v3406_v35 = vrot.slane %v3392_v34, %v4647_v24  ;;  %v2648_v45 = vrot.slane %v2626_v1, %v4647_v24  ;;  %v1840_v27 = vrot.slane %v4723_v49, %v4629_v16  ;;  %v1844_v51 = vrot.slane %v4723_v49, %v4632_v17 }
 0x398   :  { %v2655_v56 = vrot.slane %v2627_v15, %v4647_v24  ;;  %v2656_v0 = vcombine.low %v2634_v32, %v2641_v55  ;;  %v1848_v2 = vrot.slane %v4723_v49, %v4635_v18  ;;  %v1852_v42 = vrot.slane %v4723_v49, %v4638_v20 }
 0x399   :  { %v3407_v59 = vcombine.low %v3399_v3, %v3406_v35  ;;  %v1856_v60 = vrot.slane %v4723_v49, %v4641_v22  ;;  %v1860_v47 = vrot.slane %v4723_v49, %v4644_v23  ;;  %v3261_v12 = vcombine.low %v1832_v52, %v1836_v26 }
 0x39a   :  { %v2657_v44 = vcombine.low %v2648_v45, %v2655_v56  ;;  %v2664_v7 = vrot.slane %v2656_v0, %v4647_v24  ;;  %v3262_v31 = vcombine.low %v1840_v27, %v1844_v51  ;;  %v3263_v43 = vcombine.low %v1848_v2, %v1852_v42 }
 0x39b   :  { %3732 = vperm.xlu1 %4212, %v3407_v59   ;;  %v3264_v57 = vcombine.low %v1856_v60, %v1860_v47  ;;  %v3271_v58 = vrot.slane %v3261_v12, %v4647_v24  ;;  %v1352_v25 = vrot.slane %v4675_v33, %v4620_v9  ;;  %v1356_v61 = vrot.slane %v4675_v33, %v4623_v14 }
 0x39c   :  { %v2671_v48 = vrot.slane %v2657_v44, %v4647_v24  ;;  %v3278_v49 = vrot.slane %v3262_v31, %v4647_v24  ;;  %v3285_v5 = vrot.slane %v3263_v43, %v4647_v24  ;;  %v1360_v6 = vrot.slane %v4675_v33, %v4629_v16 }
 0x39d   :  { %v3292_v8 = vrot.slane %v3264_v57, %v4647_v24  ;;  %v1364_v29 = vrot.slane %v4675_v33, %v4632_v17  ;;  %v1368_v28 = vrot.slane %v4675_v33, %v4635_v18  ;;  %v1372_v10 = vrot.slane %v4675_v33, %v4638_v20 }
 0x39e   :  { %v2672_v11 = vcombine.low %v2664_v7, %v2671_v48  ;;  %v3293_v39 = vcombine.low %v3271_v58, %v3278_v49  ;;  %v1376_v46 = vrot.slane %v4675_v33, %v4641_v22  ;;  %v1380_v30 = vrot.slane %v4675_v33, %v4644_v23 }
 0x39f   :  { %v3294_v40 = vcombine.low %v3285_v5, %v3292_v8  ;;  %v2526_v34 = vcombine.low %v1352_v25, %v1356_v61  ;;  %v2527_v3 = vcombine.low %v1360_v6, %v1364_v29  ;;  %v2528_v1 = vcombine.low %v1368_v28, %v1372_v10 }
 0x3a0   :  { %3687 = vperm.xlu0 %4211, %v2672_v11   ;;  %v3301_v52 = vrot.slane %v3293_v39, %v4647_v24  ;;  %v2529_v15 = vcombine.low %v1376_v46, %v1380_v30  ;;  %v1928_v32 = vrot.slane %v4726_v50, %v4620_v9  ;;  %v1932_v55 = vrot.slane %v4726_v50, %v4623_v14 }
 0x3a1   :  { %v3308_v26 = vrot.slane %v3294_v40, %v4647_v24  ;;  %v2536_v35 = vrot.slane %v2526_v34, %v4647_v24  ;;  %v2543_v33 = vrot.slane %v2527_v3, %v4647_v24  ;;  %v2550_v45 = vrot.slane %v2528_v1, %v4647_v24 }
 0x3a2   :  { %v2557_v27 = vrot.slane %v2529_v15, %v4647_v24  ;;  %v1936_v51 = vrot.slane %v4726_v50, %v4629_v16  ;;  %v1940_v56 = vrot.slane %v4726_v50, %v4632_v17  ;;  %v1944_v0 = vrot.slane %v4726_v50, %v4635_v18 }
 0x3a3   :  { %v3309_v2 = vcombine.low %v3301_v52, %v3308_v26  ;;  %v2558_v42 = vcombine.low %v2536_v35, %v2543_v33  ;;  %v1948_v59 = vrot.slane %v4726_v50, %v4638_v20  ;;  %v1952_v60 = vrot.slane %v4726_v50, %v4641_v22 }
 0x3a4   :  { %v2559_v47 = vcombine.low %v2550_v45, %v2557_v27  ;;  %v1956_v12 = vrot.slane %v4726_v50, %v4644_v23  ;;  %v3408_v44 = vcombine.low %v1928_v32, %v1932_v55  ;;  %v3409_v7 = vcombine.low %v1936_v51, %v1940_v56 }
 0x3a5   :  { %3726 = vperm.xlu1 %4212, %v3309_v2   ;;  %v2566_v31 = vrot.slane %v2558_v42, %v4647_v24  ;;  %v3410_v43 = vcombine.low %v1944_v0, %v1948_v59  ;;  %v1608_v57 = vrot.slane %v4699_v41, %v4620_v9  ;;  %v1612_v58 = vrot.slane %v4699_v41, %v4623_v14 }
 0x3a6   :  { %v2573_v25 = vrot.slane %v2559_v47, %v4647_v24  ;;  %v3411_v61 = vcombine.low %v1952_v60, %v1956_v12  ;;  %v3418_v48 = vrot.slane %v3408_v44, %v4647_v24  ;;  %v3425_v49 = vrot.slane %v3409_v7, %v4647_v24 }
 0x3a7   :  { %v3432_v50 = vrot.slane %v3410_v43, %v4647_v24  ;;  %v1616_v5 = vrot.slane %v4699_v41, %v4629_v16  ;;  %v1620_v6 = vrot.slane %v4699_v41, %v4632_v17  ;;  %v1624_v8 = vrot.slane %v4699_v41, %v4635_v18 }
 0x3a8   :  { %v2574_v29 = vcombine.low %v2566_v31, %v2573_v25  ;;  %v3439_v28 = vrot.slane %v3411_v61, %v4647_v24  ;;  %v3440_v10 = vcombine.low %v3418_v48, %v3425_v49  ;;  %v1628_v11 = vrot.slane %v4699_v41, %v4638_v20 }
 0x3a9   :  { %v1632_v39 = vrot.slane %v4699_v41, %v4641_v22  ;;  %v1636_v46 = vrot.slane %v4699_v41, %v4644_v23  ;;  %v2918_v30 = vcombine.low %v1608_v57, %v1612_v58  ;;  %v2919_v40 = vcombine.low %v1616_v5, %v1620_v6 }
 0x3aa   :  { %3681 = vperm.xlu0 %4211, %v2574_v29   ;;  %v3441_v34 = vcombine.low %v3432_v50, %v3439_v28  ;;  %v3448_v3 = vrot.slane %v3440_v10, %v4647_v24  ;;  %v2920_v1 = vcombine.low %v1624_v8, %v1628_v11  ;;  %v1864_v52 = vrot.slane %v4734_v53, %v4620_v9 }
 0x3ab   :  { %v2921_v15 = vcombine.low %v1632_v39, %v1636_v46  ;;  %v2928_v32 = vrot.slane %v2918_v30, %v4647_v24  ;;  %v2935_v55 = vrot.slane %v2919_v40, %v4647_v24  ;;  %v1868_v26 = vrot.slane %v4734_v53, %v4623_v14 }
 0x3ac   :  { %v3455_v41 = vrot.slane %v3441_v34, %v4647_v24  ;;  %v2942_v35 = vrot.slane %v2920_v1, %v4647_v24  ;;  %v1872_v33 = vrot.slane %v4734_v53, %v4629_v16  ;;  %v1876_v45 = vrot.slane %v4734_v53, %v4632_v17 }
 0x3ad   :  { %v2949_v27 = vrot.slane %v2921_v15, %v4647_v24  ;;  %v2950_v51 = vcombine.low %v2928_v32, %v2935_v55  ;;  %v1880_v56 = vrot.slane %v4734_v53, %v4635_v18  ;;  %v1884_v0 = vrot.slane %v4734_v53, %v4638_v20 }
 0x3ae   :  { %v3456_v2 = vcombine.low %v3448_v3, %v3455_v41  ;;  %v1888_v42 = vrot.slane %v4734_v53, %v4641_v22  ;;  %v1892_v59 = vrot.slane %v4734_v53, %v4644_v23  ;;  %v3310_v60 = vcombine.low %v1864_v52, %v1868_v26 }
 0x3af   :  { %v2951_v47 = vcombine.low %v2942_v35, %v2949_v27  ;;  %v2958_v12 = vrot.slane %v2950_v51, %v4647_v24  ;;  %v3311_v44 = vcombine.low %v1872_v33, %v1876_v45  ;;  %v3312_v7 = vcombine.low %v1880_v56, %v1884_v0 }
 0x3b0   :  { %3735 = vperm.xlu1 %4212, %v3456_v2   ;;  %v3313_v31 = vcombine.low %v1888_v42, %v1892_v59  ;;  %v3320_v43 = vrot.slane %v3310_v60, %v4647_v24  ;;  %v1448_v57 = vrot.slane %v4684_v36, %v4620_v9  ;;  %v1452_v58 = vrot.slane %v4684_v36, %v4623_v14 }
 0x3b1   :  { %v2965_v25 = vrot.slane %v2951_v47, %v4647_v24  ;;  %v3327_v53 = vrot.slane %v3311_v44, %v4647_v24  ;;  %v3334_v61 = vrot.slane %v3312_v7, %v4647_v24  ;;  %v1456_v48 = vrot.slane %v4684_v36, %v4629_v16 }
 0x3b2   :  { %v3341_v49 = vrot.slane %v3313_v31, %v4647_v24  ;;  %v1460_v50 = vrot.slane %v4684_v36, %v4632_v17  ;;  %v1464_v5 = vrot.slane %v4684_v36, %v4635_v18  ;;  %v1468_v6 = vrot.slane %v4684_v36, %v4638_v20 }
 0x3b3   :  { %v2966_v8 = vcombine.low %v2958_v12, %v2965_v25  ;;  %v3342_v29 = vcombine.low %v3320_v43, %v3327_v53  ;;  %v1472_v28 = vrot.slane %v4684_v36, %v4641_v22  ;;  %v1476_v10 = vrot.slane %v4684_v36, %v4644_v23 }
 0x3b4   :  { %v3343_v11 = vcombine.low %v3334_v61, %v3341_v49  ;;  %v2673_v39 = vcombine.low %v1448_v57, %v1452_v58  ;;  %v2674_v46 = vcombine.low %v1456_v48, %v1460_v50  ;;  %v2675_v30 = vcombine.low %v1464_v5, %v1468_v6 }
 0x3b5   :  { %3705 = vperm.xlu0 %4211, %v2966_v8   ;;  %v3350_v40 = vrot.slane %v3342_v29, %v4647_v24  ;;  %v2676_v34 = vcombine.low %v1472_v28, %v1476_v10  ;;  %v2024_v3 = vrot.slane %v4754_v19, %v4620_v9  ;;  %v2028_v1 = vrot.slane %v4754_v19, %v4623_v14 }
 0x3b6   :  { %v3357_v52 = vrot.slane %v3343_v11, %v4647_v24  ;;  %v2683_v15 = vrot.slane %v2673_v39, %v4647_v24  ;;  %v2690_v36 = vrot.slane %v2674_v46, %v4647_v24  ;;  %v2697_v32 = vrot.slane %v2675_v30, %v4647_v24 }
 0x3b7   :  { %v2704_v55 = vrot.slane %v2676_v34, %v4647_v24  ;;  %v2032_v26 = vrot.slane %v4754_v19, %v4629_v16  ;;  %v2036_v41 = vrot.slane %v4754_v19, %v4632_v17  ;;  %v2040_v35 = vrot.slane %v4754_v19, %v4635_v18 }
 0x3b8   :  { %v3358_v33 = vcombine.low %v3350_v40, %v3357_v52  ;;  %v2705_v45 = vcombine.low %v2683_v15, %v2690_v36  ;;  %v2044_v27 = vrot.slane %v4754_v19, %v4638_v20  ;;  %v2048_v51 = vrot.slane %v4754_v19, %v4641_v22 }
 0x3b9   :  { %v2706_v56 = vcombine.low %v2697_v32, %v2704_v55  ;;  %v2052_v0 = vrot.slane %v4754_v19, %v4644_v23  ;;  %v3555_v2 = vcombine.low %v2024_v3, %v2028_v1  ;;  %v3556_v42 = vcombine.low %v2032_v26, %v2036_v41 }
 0x3ba   :  { %3729 = vperm.xlu1 %4212, %v3358_v33   ;;  %v2713_v59 = vrot.slane %v2705_v45, %v4647_v24  ;;  %v3557_v60 = vcombine.low %v2040_v35, %v2044_v27  ;;  %v1480_v47 = vrot.slane %v4687_v37, %v4620_v9  ;;  %v1484_v12 = vrot.slane %v4687_v37, %v4623_v14 }
 0x3bb   :  { %v2720_v44 = vrot.slane %v2706_v56, %v4647_v24  ;;  %v3558_v7 = vcombine.low %v2048_v51, %v2052_v0  ;;  %v3565_v31 = vrot.slane %v3555_v2, %v4647_v24  ;;  %v3572_v43 = vrot.slane %v3556_v42, %v4647_v24 }
 0x3bc   :  { %v3579_v19 = vrot.slane %v3557_v60, %v4647_v24  ;;  %v1488_v57 = vrot.slane %v4687_v37, %v4629_v16  ;;  %v1492_v58 = vrot.slane %v4687_v37, %v4632_v17  ;;  %v1496_v25 = vrot.slane %v4687_v37, %v4635_v18 }
 0x3bd   :  { %v2721_v53 = vcombine.low %v2713_v59, %v2720_v44  ;;  %v3586_v61 = vrot.slane %v3558_v7, %v4647_v24  ;;  %v3587_v48 = vcombine.low %v3565_v31, %v3572_v43  ;;  %v1500_v49 = vrot.slane %v4687_v37, %v4638_v20 }
 0x3be   :  { %v1504_v50 = vrot.slane %v4687_v37, %v4641_v22  ;;  %v1508_v5 = vrot.slane %v4687_v37, %v4644_v23  ;;  %v2722_v6 = vcombine.low %v1480_v47, %v1484_v12  ;;  %v2723_v8 = vcombine.low %v1488_v57, %v1492_v58 }
 0x3bf   :  { %3690 = vperm.xlu0 %4211, %v2721_v53   ;;  %v3588_v29 = vcombine.low %v3579_v19, %v3586_v61  ;;  %v3595_v28 = vrot.slane %v3587_v48, %v4647_v24  ;;  %v2724_v10 = vcombine.low %v1496_v25, %v1500_v49  ;;  %v1960_v11 = vrot.slane %v4772_v62, %v4620_v9 }
 0x3c0   :  { %v2725_v39 = vcombine.low %v1504_v50, %v1508_v5  ;;  %v2732_v46 = vrot.slane %v2722_v6, %v4647_v24  ;;  %v2739_v30 = vrot.slane %v2723_v8, %v4647_v24  ;;  %v1964_v40 = vrot.slane %v4772_v62, %v4623_v14 }
 0x3c1   :  { %v3602_v37 = vrot.slane %v3588_v29, %v4647_v24  ;;  %v2746_v34 = vrot.slane %v2724_v10, %v4647_v24  ;;  %v1968_v3 = vrot.slane %v4772_v62, %v4629_v16  ;;  %v1972_v1 = vrot.slane %v4772_v62, %v4632_v17 }
 0x3c2   :  { %v2753_v52 = vrot.slane %v2725_v39, %v4647_v24  ;;  %v2754_v15 = vcombine.low %v2732_v46, %v2739_v30  ;;  %v1976_v36 = vrot.slane %v4772_v62, %v4635_v18  ;;  %v1980_v32 = vrot.slane %v4772_v62, %v4638_v20 }
 0x3c3   :  { %v3603_v55 = vcombine.low %v3595_v28, %v3602_v37  ;;  %v1984_v26 = vrot.slane %v4772_v62, %v4641_v22  ;;  %v1988_v41 = vrot.slane %v4772_v62, %v4644_v23  ;;  %v3457_v35 = vcombine.low %v1960_v11, %v1964_v40 }
 0x3c4   :  { %v2755_v33 = vcombine.low %v2746_v34, %v2753_v52  ;;  %v2762_v45 = vrot.slane %v2754_v15, %v4647_v24  ;;  %v3458_v27 = vcombine.low %v1968_v3, %v1972_v1  ;;  %v3459_v51 = vcombine.low %v1976_v36, %v1980_v32 }
 0x3c5   :  { %3744 = vperm.xlu1 %4212, %v3603_v55   ;;  %v3460_v56 = vcombine.low %v1984_v26, %v1988_v41  ;;  %v3467_v0 = vrot.slane %v3457_v35, %v4647_v24  ;;  %v1512_v2 = vrot.slane %v4690_v21, %v4620_v9  ;;  %v1516_v42 = vrot.slane %v4690_v21, %v4623_v14 }
 0x3c6   :  { %v2769_v59 = vrot.slane %v2755_v33, %v4647_v24  ;;  %v3474_v62 = vrot.slane %v3458_v27, %v4647_v24  ;;  %v3481_v60 = vrot.slane %v3459_v51, %v4647_v24  ;;  %v1520_v47 = vrot.slane %v4690_v21, %v4629_v16 }
 0x3c7   :  { %v3488_v12 = vrot.slane %v3460_v56, %v4647_v24  ;;  %v1524_v44 = vrot.slane %v4690_v21, %v4632_v17  ;;  %v1528_v7 = vrot.slane %v4690_v21, %v4635_v18  ;;  %v1532_v31 = vrot.slane %v4690_v21, %v4638_v20 }
 0x3c8   :  { %v2770_v43 = vcombine.low %v2762_v45, %v2769_v59  ;;  %v3489_v19 = vcombine.low %v3467_v0, %v3474_v62  ;;  %v1536_v57 = vrot.slane %v4690_v21, %v4641_v22  ;;  %v1540_v58 = vrot.slane %v4690_v21, %v4644_v23 }
 0x3c9   :  { %v3490_v25 = vcombine.low %v3481_v60, %v3488_v12  ;;  %v2771_v53 = vcombine.low %v1512_v2, %v1516_v42  ;;  %v2772_v61 = vcombine.low %v1520_v47, %v1524_v44  ;;  %v2773_v48 = vcombine.low %v1528_v7, %v1532_v31 }
 0x3ca   :  { %3693 = vperm.xlu0 %4211, %v2770_v43   ;;  %v3497_v49 = vrot.slane %v3489_v19, %v4647_v24  ;;  %v2774_v50 = vcombine.low %v1536_v57, %v1540_v58  ;;  %v1992_v5 = vrot.slane %v4858_v13, %v4620_v9  ;;  %v1996_v6 = vrot.slane %v4858_v13, %v4623_v14 }
 0x3cb   :  { %v3504_v8 = vrot.slane %v3490_v25, %v4647_v24  ;;  %v2781_v29 = vrot.slane %v2771_v53, %v4647_v24  ;;  %v2788_v21 = vrot.slane %v2772_v61, %v4647_v24  ;;  %v2795_v28 = vrot.slane %v2773_v48, %v4647_v24 }
 0x3cc   :  { %v2802_v10 = vrot.slane %v2774_v50, %v4647_v24  ;;  %v2000_v11 = vrot.slane %v4858_v13, %v4629_v16  ;;  %v2004_v39 = vrot.slane %v4858_v13, %v4632_v17  ;;  %v2008_v46 = vrot.slane %v4858_v13, %v4635_v18 }
 0x3cd   :  { %v3505_v30 = vcombine.low %v3497_v49, %v3504_v8  ;;  %v2803_v40 = vcombine.low %v2781_v29, %v2788_v21  ;;  %v2012_v37 = vrot.slane %v4858_v13, %v4638_v20  ;;  %v2016_v34 = vrot.slane %v4858_v13, %v4641_v22 }
 0x3ce   :  { %v2804_v3 = vcombine.low %v2795_v28, %v2802_v10  ;;  %v2020_v1 = vrot.slane %v4858_v13, %v4644_v23  ;;  %v3506_v52 = vcombine.low %v1992_v5, %v1996_v6  ;;  %v3507_v15 = vcombine.low %v2000_v11, %v2004_v39 }
 0x3cf   :  { %3738 = vperm.xlu1 %4212, %v3505_v30   ;;  %v2811_v36 = vrot.slane %v2803_v40, %v4647_v24  ;;  %v3508_v32 = vcombine.low %v2008_v46, %v2012_v37  ;;  %v1544_v55 = vrot.slane %v4693_v38, %v4620_v9  ;;  %v1548_v26 = vrot.slane %v4693_v38, %v4623_v14 }
 0x3d0   :  { %v2818_v41 = vrot.slane %v2804_v3, %v4647_v24  ;;  %v3509_v35 = vcombine.low %v2016_v34, %v2020_v1  ;;  %v3516_v33 = vrot.slane %v3506_v52, %v4647_v24  ;;  %v3523_v45 = vrot.slane %v3507_v15, %v4647_v24  ;;  %v5439_v34 = vpop.permute.xlu0 %3660  ;;  %v3655_v52 = vpop.permute.xlu1 %3654 }
 0x3d1   :  { %v3530_v13 = vrot.slane %v3508_v32, %v4647_v24  ;;  %v1552_v27 = vrot.slane %v4693_v38, %v4629_v16  ;;  %v1556_v51 = vrot.slane %v4693_v38, %v4632_v17  ;;  %v1560_v56 = vrot.slane %v4693_v38, %v4635_v18 }
 0x3d2   :  { %v2819_v0 = vcombine.low %v2811_v36, %v2818_v41  ;;  %v3537_v2 = vrot.slane %v3509_v35, %v4647_v24  ;;  %v3538_v42 = vcombine.low %v3516_v33, %v3523_v45  ;;  %v1564_v59 = vrot.slane %v4693_v38, %v4638_v20 }
 0x3d3   :  { %v1568_v62 = vrot.slane %v4693_v38, %v4641_v22  ;;  %v1572_v60 = vrot.slane %v4693_v38, %v4644_v23  ;;  %v2820_v47 = vcombine.low %v1544_v55, %v1548_v26  ;;  %v2821_v12 = vcombine.low %v1552_v27, %v1556_v51 }
 0x3d4   :  { %3696 = vperm.xlu0 %4211, %v2819_v0   ;;  %v3539_v44 = vcombine.low %v3530_v13, %v3537_v2  ;;  %v3546_v7 = vrot.slane %v3538_v42, %v4647_v24  ;;  %v2822_v31 = vcombine.low %v1560_v56, %v1564_v59  ;;  %v2056_v43 = vrot.slane %v4811_v54, %v4620_v9  ;;  %v5441_v3 = vpop.permute.xlu0 %3663  ;;  %v3709_v36 = vpop.permute.xlu1 %3708 }
 0x3d5   :  { %v2823_v19 = vcombine.low %v1568_v62, %v1572_v60  ;;  %v2830_v57 = vrot.slane %v2820_v47, %v4647_v24  ;;  %v2837_v58 = vrot.slane %v2821_v12, %v4647_v24  ;;  %v2060_v25 = vrot.slane %v4811_v54, %v4623_v14 }
 0x3d6   :  { %v3553_v38 = vrot.slane %v3539_v44, %v4647_v24  ;;  %v2844_v53 = vrot.slane %v2822_v31, %v4647_v24  ;;  %v2064_v61 = vrot.slane %v4811_v54, %v4629_v16  ;;  %v2068_v48 = vrot.slane %v4811_v54, %v4632_v17 }
 0x3d7   :  { %v2851_v9 = vrot.slane %v2823_v19, %v4647_v24  ;;  %v2852_v49 = vcombine.low %v2830_v57, %v2837_v58  ;;  %v2072_v50 = vrot.slane %v4811_v54, %v4635_v18  ;;  %v2076_v5 = vrot.slane %v4811_v54, %v4638_v20 }
 0x3d8   :  { %v3554_v14 = vcombine.low %v3546_v7, %v3553_v38  ;;  %v2080_v6 = vrot.slane %v4811_v54, %v4641_v22  ;;  %v2084_v8 = vrot.slane %v4811_v54, %v4644_v23  ;;  %v3604_v16 = vcombine.low %v2056_v43, %v2060_v25  ;;  %v3658_v1 = vpop.permute.xlu0 %3657  ;;  %v3703_v55 = vpop.permute.xlu1 %3702 }
 0x3d9   :  { %v2853_v29 = vcombine.low %v2844_v53, %v2851_v9  ;;  %v2860_v17 = vrot.slane %v2852_v49, %v4647_v24  ;;  %v3605_v21 = vcombine.low %v2064_v61, %v2068_v48  ;;  %v3606_v28 = vcombine.low %v2072_v50, %v2076_v5 }
 0x3da   :  { %3741 = vperm.xlu1 %4212, %v3554_v14   ;;  %v3607_v10 = vcombine.low %v2080_v6, %v2084_v8  ;;  %v3614_v18 = vrot.slane %v3604_v16, %v4647_v24  ;;  %v5462_v42 = vand.u32 127, %v993_v63 }
 0x3db   :  { %v2867_v11 = vrot.slane %v2853_v29, %v4647_v24  ;;  %v3621_v20 = vrot.slane %v3605_v21, %v4647_v24  ;;  %v3628_v39 = vrot.slane %v3606_v28, %v4647_v24 }
 0x3dc   :  { %v3635_v22 = vrot.slane %v3607_v10, %v4647_v24  ;;  %v5443_v15 = vpop.permute.xlu0 %3672  ;;  %v3755_v59 = vadd.s32 4294967288, %v5462_v42  ;;  %v3762_v12 = vadd.s32 4294967280, %v5462_v42  ;;  %v3753_v44 = vsub.s32 %v5462_v42, %v4617_v4 }
 0x3dd   :  { %v2868_v46 = vcombine.low %v2860_v17, %v2867_v11  ;;  %v3636_v23 = vcombine.low %v3614_v18, %v3621_v20  ;;  %v3769_v31 = vadd.s32 4294967272, %v5462_v42  ;;  %v3776_v38 = vadd.s32 4294967264, %v5462_v42 }
 0x3de   :  { %v3637_v54 = vcombine.low %v3628_v39, %v3635_v22  ;;  %v3758_v47 = vsub.s32 %v3755_v59, %v4617_v4  ;;  %v3863_v43 = vrot.slane %v3703_v55, %v3753_v44  ;;  %v3765_v19 = vsub.s32 %v3762_v12, %v4617_v4 }
 0x3df   :  { %3699 = vperm.xlu0 %4211, %v2868_v46   ;;  %v3644_v30 = vrot.slane %v3636_v23, %v4647_v24  ;;  %v3772_v53 = vsub.s32 %v3769_v31, %v4617_v4  ;;  %v3783_v9 = vadd.s32 4294967256, %v5462_v42  ;;  %v3779_v49 = vsub.s32 %v3776_v38, %v4617_v4 }
 0x3e0   :  { %v3651_v40 = vrot.slane %v3637_v54, %v4647_v24  ;;  %v3872_v25 = vrot.slane %v3709_v36, %v3765_v19  ;;  %v3790_v14 = vadd.s32 4294967248, %v5462_v42  ;;  %v3759_v8 = vrot.slane %v3658_v1, %v3758_v47 }
 0x3e1   :  { %v3712_v41 = vpop.permute.xlu1 %3711  ;;  %v3786_v16 = vsub.s32 %v3783_v9, %v4617_v4  ;;  %v3754_v17 = vrot.slane %v3655_v52, %v3753_v44  ;;  %v3797_v21 = vadd.s32 4294967240, %v5462_v42  ;;  %v3766_v39 = vrot.slane %v5439_v34, %v3765_v19 }
 0x3e2   :  { %v3652_v37 = vcombine.low %v3644_v30, %v3651_v40  ;;  %v3877_v48 = vrot.slane %v3712_v41, %v3772_v53  ;;  %v3793_v10 = vsub.s32 %v3790_v14, %v4617_v4  ;;  %v3804_v46 = vadd.s32 4294967232, %v5462_v42 }
 0x3e3   :  { %v3761_v11 = vsel %vm3760_vm1, %v3759_v8, %v3754_v17  ;;  %v3800_v23 = vsub.s32 %v3797_v21, %v4617_v4  ;;  %v3773_v1 = vrot.slane %v5441_v3, %v3772_v53  ;;  %v3811_v36 = vadd.s32 4294967224, %v5462_v42 }
 0x3e4   :  { %3747 = vperm.xlu1 %4212, %v3652_v37   ;;  %v3768_v30 = vsel %vm3767_vm2, %v3766_v39, %v3761_v11  ;;  %v3807_v55 = vsub.s32 %v3804_v46, %v4617_v4  ;;  %v3825_v44 = vadd.s32 4294967208, %v5462_v42  ;;  %v3832_v19 = vadd.s32 4294967200, %v5462_v42 }
 0x3e5   :  { %v3839_v38 = vadd.s32 4294967192, %v5462_v42  ;;  %v3853_v9 = vadd.s32 4294967176, %v5462_v42 }
 0x3e6   :  { %v5445_v32 = vpop.permute.xlu0 %3666 }
 0x3e7   :  { %v3780_v40 = vrot.slane %v5445_v32, %v3779_v49  ;;  %v3856_v17 = vsub.s32 %v3853_v9, %v4617_v4 }
 0x3ec   :  { %v3721_v33 = vpop.permute.xlu1 %3720 }
 0x3ed   :  { %v3892_v22 = vrot.slane %v3721_v33, %v3793_v10  ;;  %v3775_v33 = vsel %vm3774_vm3, %v3773_v1, %v3768_v30 }
 0x3f1   :  { %v5447_v26 = vpop.permute.xlu0 %3675 }
 0x3f6   :  { %v3715_v13 = vpop.permute.xlu1 %3714 }
 0x3f7   :  { %v3882_v6 = vrot.slane %v3715_v13, %v3779_v49  ;;  %v3818_v13 = vadd.s32 4294967216, %v5462_v42 }
 0x3f9   :  { %v3821_v12 = vsub.s32 %v3818_v13, %v4617_v4 }
 0x3fb   :  { %v5449_v35 = vpop.permute.xlu0 %3669 }
 0x3fc   :  { %v3787_v52 = vrot.slane %v5449_v35, %v3786_v16 }
 0x401   :  { %v5455_v51 = vpop.permute.xlu1 %3723 }
 0x402   :  { %v3897_v34 = vrot.slane %v5455_v51, %v3800_v23  ;;  %v3814_v51 = vsub.s32 %v3811_v36, %v4617_v4 }
 0x406   :  { %v5451_v45 = vpop.permute.xlu0 %3684 }
 0x407   :  { %v3822_v8 = vrot.slane %v5451_v45, %v3821_v12 }
 0x40b   :  { %v3718_v0 = vpop.permute.xlu1 %3717 }
 0x40c   :  { %v3887_v28 = vrot.slane %v3718_v0, %v3786_v16  ;;  %v3782_v0 = vsel %vm3781_vm4, %v3780_v40, %v3775_v33 }
 0x40d   :  { %v3789_v35 = vsel %vm3788_vm5, %v3787_v52, %v3782_v0 }
 0x410   :  { %v5453_v27 = vpop.permute.xlu0 %3678 }
 0x416   :  { %v5465_v62 = vpop.permute.xlu1 %3732 }
 0x417   :  { %v3912_v53 = vrot.slane %v5465_v62, %v3821_v12  ;;  %v3842_v62 = vsub.s32 %v3839_v38, %v4617_v4 }
 0x41b   :  { %v5457_v56 = vpop.permute.xlu0 %3687 }
 0x420   :  { %v3727_v57 = vpop.permute.xlu1 %3726 }
 0x421   :  { %v3902_v3 = vrot.slane %v3727_v57, %v3807_v55 }
 0x425   :  { %v5459_v2 = vpop.permute.xlu0 %3681 }
 0x42b   :  { %v5479_v50 = vpop.permute.xlu1 %3735 }
 0x430   :  { %v3706_v60 = vpop.permute.xlu0 %3705 }
 0x431   :  { %v3867_v7 = vrot.slane %v3706_v60, %v3758_v47  ;;  %v3794_v60 = vrot.slane %v5443_v15, %v3793_v10 }
 0x433   :  { %v3868_v58 = vsel %vm3760_vm1, %v3867_v7, %v3863_v43  ;;  %v3796_v31 = vsel %vm3795_vm6, %v3794_v60, %v3789_v35  ;;  %v3808_v43 = vrot.slane %v5453_v27, %v3807_v55 }
 0x434   :  { %v3873_v61 = vsel %vm3767_vm2, %v3872_v25, %v3868_v58  ;;  %v3801_v58 = vrot.slane %v5447_v26, %v3800_v23  ;;  %v3815_v25 = vrot.slane %v5459_v2, %v3814_v51  ;;  %v3835_v26 = vsub.s32 %v3832_v19, %v4617_v4 }
 0x435   :  { %v3878_v5 = vsel %vm3774_vm3, %v3877_v48, %v3873_v61  ;;  %v3730_v18 = vpop.permute.xlu1 %3729  ;;  %v3828_v48 = vsub.s32 %v3825_v44, %v4617_v4  ;;  %v3846_v2 = vadd.s32 4294967184, %v5462_v42 }
 0x436   :  { %v3883_v29 = vsel %vm3781_vm4, %v3882_v6, %v3878_v5  ;;  %v3907_v7 = vrot.slane %v3730_v18, %v3814_v51  ;;  %v3803_v61 = vsel %vm3802_vm7, %v3801_v58, %v3796_v31 }
 0x437   :  { %v3888_v20 = vsel %vm3788_vm5, %v3887_v28, %v3883_v29  ;;  %v3810_v49 = vsel %vm3809_vm8, %v3808_v43, %v3803_v61  ;;  %v3917_v6 = vrot.slane %v5479_v50, %v3828_v48  ;;  %v3849_v10 = vsub.s32 %v3846_v2, %v4617_v4 }
 0x438   :  { %v3893_v37 = vsel %vm3795_vm6, %v3892_v22, %v3888_v20  ;;  %v3817_v14 = vsel %vm3816_vm9, %v3815_v25, %v3810_v49  ;;  %v3829_v18 = vrot.slane %v5457_v56, %v3828_v48 }
 0x439   :  { %v3898_v32 = vsel %vm3802_vm7, %v3897_v34, %v3893_v37  ;;  %v3824_v21 = vsel %vm3823_vm10, %v3822_v8, %v3817_v14 }
 0x43a   :  { %v5492_v54 = vpop.permute.xlu0 %3690  ;;  %v3903_v47 = vsel %vm3809_vm8, %v3902_v3, %v3898_v32  ;;  %v3831_v22 = vsel %vm3830_vm11, %v3829_v18, %v3824_v21 }
 0x43b   :  { %v3908_v15 = vsel %vm3816_vm9, %v3907_v7, %v3903_v47  ;;  %v3836_v28 = vrot.slane %v5492_v54, %v3835_v26 }
 0x43c   :  { %v3913_v5 = vsel %vm3823_vm10, %v3912_v53, %v3908_v15 }
 0x43d   :  { %v3918_v29 = vsel %vm3830_vm11, %v3917_v6, %v3913_v5  ;;  %v3838_v23 = vsel %vm3837_vm12, %v3836_v28, %v3831_v22 }
 0x440   :  { %v5502_v41 = vpop.permute.xlu1 %3744 }
 0x441   :  { %v3932_v4 = vrot.slane %v5502_v41, %v3849_v10 }
 0x445   :  { %v3694_v59 = vpop.permute.xlu0 %3693 }
 0x446   :  { %v3843_v50 = vrot.slane %v3694_v59, %v3842_v62 }
 0x448   :  { %v3845_v30 = vsel %vm3844_vm13, %v3843_v50, %v3838_v23 }
 0x44a   :  { %v3739_v57 = vpop.permute.xlu1 %3738 }
 0x44b   :  { %v3922_v42 = vrot.slane %v3739_v57, %v3835_v26 }
 0x44d   :  { %v3923_v45 = vsel %vm3837_vm12, %v3922_v42, %v3918_v29 }
 0x44f   :  { %v3697_v27 = vpop.permute.xlu0 %3696 }
 0x450   :  { %v3850_v39 = vrot.slane %v3697_v27, %v3849_v10 }
 0x452   :  { %v3852_v40 = vsel %vm3851_vm14, %v3850_v39, %v3845_v30 }
 0x455   :  { %v3742_v16 = vpop.permute.xlu1 %3741 }
 0x456   :  { %v3927_v11 = vrot.slane %v3742_v16, %v3842_v62 }
 0x458   :  { %v3928_v54 = vsel %vm3844_vm13, %v3927_v11, %v3923_v45 }
 0x459   :  { %v3933_v52 = vsel %vm3851_vm14, %v3932_v4, %v3928_v54 }
 0x45a   :  { %v3700_v20 = vpop.permute.xlu0 %3699 }
 0x45b   :  { %v3857_v46 = vrot.slane %v3700_v20, %v3856_v17 }
 0x45d   :  { %v3859_v56 = vsel %vm3858_vm15, %v3857_v46, %v3852_v40 }
 0x45f   :  { %v3748_v37 = vpop.permute.xlu1 %3747 }
 0x460   :  { %v3937_v1 = vrot.slane %v3748_v37, %v3856_v17 }
 0x462   :  { %v3938_v34 = vsel %vm3858_vm15, %v3937_v1, %v3933_v52 }
 0x463   :  { %v3939_v36 = vcombine.low %v3859_v56, %v3938_v34 }
 0x465   :  { %v3946_v55 = vrot.slane %v3939_v36, %v4647_v24 }
 0x467   :  { %v3953_v33 = vrot.slane %v3946_v55, %v4647_v24 }
 0x469   :  { %3959 = vst.msk [vmem:[#allocation3] sm:$0x3] %vm3957_vm0, %v3953_v33 }
 0x46a   :  { %4241 = shalt.err (!%p4238_p4)
}
 0x46b   :  { %3969 = dma.vmem_to_hbm [thread:$0]  %s3967_s22, 32, %s5551_s6, [#allocation4]  }
 0x46c   :  { %4250 = dma.done.wait [#allocation4], 32  }
 0x46d   :  { %4251 = vsyncadd [#allocation4], 4294967264 }
 0x46e   :  { %3973 = vsyncpa [#allocation4], 1 }

</bundles_post_ra>
